<compile_context>
chip_gen: v7x
topology: tpu7x:2x2x1
jax: 0.10.0
libtpu: 0.0.40
codegen_flags: <defaults>
</compile_context>

<pallas_src>
import numpy as np
import jax
import jax.numpy as jnp
from jax.experimental import pallas as pl
from jax.experimental.pallas import tpu as pltpu

HID_PAD = 128      # lane-dense hidden width (conv weights zero-padded to 128 cols)
OUT_LANES = 128    # lane-dense output slab; wrapper slices [:, :1]


def _round_up(x, m):
    return (x + m - 1) // m * m


# ----------------------------------------------------------------------------
# Glue: Dual Hypergraph Transform (DHT) -> dense incidence matrix
# ----------------------------------------------------------------------------
def build_dual_incidence(edge_index):
    """Dense incidence H[dual_node, hyperedge] of the DHT (add_loops=True)."""
    ei = np.asarray(edge_index)
    num_edge = ei.shape[1]
    row0 = np.repeat(np.arange(num_edge), 2)          # dual node (= graph edge id)
    row1 = ei.T.reshape(-1)                            # hyperedge  (= graph node id)
    binc = np.bincount(row1)
    mask = binc[row1] != 1                             # drop degree-1 hyperedges
    max_edge = int(row1.max())
    M = max_edge + 1 + num_edge                        # + self-loop hyperedges
    H = np.zeros((num_edge, M), dtype=np.float32)
    np.add.at(H, (row0[mask], row1[mask]), 1.0)
    H[np.arange(num_edge), np.arange(max_edge + 1, max_edge + 1 + num_edge)] += 1.0
    return H


# ----------------------------------------------------------------------------
# Pallas kernel
# ----------------------------------------------------------------------------
def make_explainer_kernel(num_layers):
    def kernel(*refs):
        x_ref, h_ref, ht_ref, bmat_ref, valid_ref = refs[:5]
        layer_refs = refs[5:5 + 3 * num_layers]   # (w_l, bias_l, mlp_w_l) per layer
        mlp_b_ref = refs[5 + 3 * num_layers]
        out_ref = refs[-1]

        h = h_ref[...]            # [E, M] bf16 dual incidence
        ht = ht_ref[...]          # [M, E] bf16 (host-precomputed transpose)
        valid = valid_ref[...]    # [E, 1] f32, 1.0 for real dual nodes
        x = x_ref[...]            # [E, F_in] f32 dual-node (edge) features

        # D^-1 (dual-node degree) and B^-1 (hyperedge size) as lane reductions.
        d = jnp.sum(h.astype(jnp.float32), axis=1, keepdims=True)    # [E, 1]
        b = jnp.sum(ht.astype(jnp.float32), axis=1, keepdims=True)   # [M, 1]
        d_inv = jnp.where(d > 0.0, pl.reciprocal(d, approx=True), 0.0)
        b_inv = jnp.where(b > 0.0, pl.reciprocal(b, approx=True), 0.0)

        cur = x
        z = jnp.zeros_like(valid)                 # fused-MLP accumulator [E, 1]
        for l in range(num_layers):
            w = layer_refs[3 * l][...]            # [F_l, HID_PAD] f32 (zero-padded)
            bias = layer_refs[3 * l + 1][...]     # [1, HID_PAD]
            mw = layer_refs[3 * l + 2][...]       # [HID_PAD, 1] (MLP slice for layer l)

            xl = jnp.dot(cur, w, preferred_element_type=jnp.float32)            # [E, HID_PAD]
            # node -> hyperedge aggregation (bf16 MXU, f32 acc), scaled by 1/|e|
            he = jnp.dot(ht, xl.astype(jnp.bfloat16),
                         preferred_element_type=jnp.float32)                    # [M, HID_PAD]
            he = he * b_inv
            # hyperedge -> node aggregation, scaled by 1/deg(v), + bias, ReLU
            agg = jnp.dot(h, he.astype(jnp.bfloat16),
                          preferred_element_type=jnp.float32)                   # [E, HID_PAD]
            cur = jnp.maximum(d_inv * agg + bias, 0.0) * valid                  # zero padded rows
            # fused final MLP: z += feats_l @ mlp_w[l*H:(l+1)*H]
            z = z + jnp.dot(cur, mw, preferred_element_type=jnp.float32)        # [E, 1]
        z = z + mlp_b_ref[...]

        # grouped softmax over edge_batch (torch_geometric.utils.softmax semantics)
        bm = bmat_ref[...].astype(jnp.float32)                                  # [E, G]
        neg = jnp.float32(-1e30)
        zmask = jnp.where(bm > 0.0, z, neg)                                     # [E, G]
        gmax = jnp.max(zmask, axis=0, keepdims=True)                            # [1, G]
        row_max = jnp.sum(bm * gmax, axis=1, keepdims=True)                     # [E, 1]
        ez = jnp.exp(z - row_max) * valid                                       # [E, 1]
        gsum = jnp.sum(bm * ez, axis=0, keepdims=True)                          # [1, G]
        row_sum = jnp.sum(bm * gsum, axis=1, keepdims=True)                     # [E, 1]
        prob = ez * pl.reciprocal(row_sum + jnp.float32(1e-16), approx=True)    # [E, 1]
        # lane-dense output slab (unmasked stores); wrapper slices [:, :1]
        out_ref[...] = jnp.broadcast_to(prob, out_ref.shape)

    return kernel


# ----------------------------------------------------------------------------
# Parameters (deterministic, synthetic), at logical (un-padded) shapes
# ----------------------------------------------------------------------------
def init_params(key, input_dim, input_dim_edge, hidden_dim, num_gc_layers):
    use_edge_attr = bool(input_dim_edge)
    in0 = input_dim_edge if use_edge_attr else input_dim
    convs = []
    for i in range(num_gc_layers):
        key, kw, kb = jax.random.split(key, 3)
        fan_in = in0 if i == 0 else hidden_dim
        w = jax.random.normal(kw, (fan_in, hidden_dim), jnp.float32) / np.sqrt(fan_in)
        b = jax.random.normal(kb, (1, hidden_dim), jnp.float32) * 0.01
        convs.append((w, b))
    key, kw, kb = jax.random.split(key, 3)
    mlp_w = jax.random.normal(kw, (hidden_dim * num_gc_layers, 1),
                              jnp.float32) / np.sqrt(hidden_dim * num_gc_layers)
    mlp_b = jax.random.normal(kb, (1, 1), jnp.float32) * 0.01
    return {"use_edge_attr": use_edge_attr, "hidden_dim": hidden_dim,
            "convs": convs, "mlp": (mlp_w, mlp_b)}


# ----------------------------------------------------------------------------
# Forward wrapper
# ----------------------------------------------------------------------------
def explainer_hgnn_forward(params, x, edge_index, edge_attr, batch):
    edge_index = np.asarray(edge_index)
    batch_np = np.asarray(batch)

    if not params["use_edge_attr"]:
        x_np = np.asarray(x)
        edge_attr = (x_np[edge_index[0]] + x_np[edge_index[1]]) / 2.0   # glue gather
    edge_attr = np.asarray(edge_attr, np.float32)

    edge_batch = batch_np[edge_index[0]]                          # DHT edge_batch
    num_graphs = int(batch_np.max()) + 1

    H = build_dual_incidence(edge_index)                          # [E, M] (0/1)
    E, M = H.shape
    E_pad = _round_up(max(E, 8), 128)
    M_pad = _round_up(max(M, 128), 128)

    H_pad = np.zeros((E_pad, M_pad), np.float32)
    H_pad[:E, :M] = H
    x_pad = np.zeros((E_pad, edge_attr.shape[1]), np.float32)
    x_pad[:E] = edge_attr
    bmat = np.zeros((E_pad, num_graphs), np.float32)
    bmat[np.arange(E), edge_batch] = 1.0
    valid = np.zeros((E_pad, 1), np.float32)
    valid[:E] = 1.0

    hidden = params["hidden_dim"]
    num_layers = len(params["convs"])
    mlp_w, mlp_b = params["mlp"]

    args = [jnp.asarray(x_pad),
            jnp.asarray(H_pad, dtype=jnp.bfloat16),        # H is 0/1 -> exact in bf16
            jnp.asarray(H_pad.T, dtype=jnp.bfloat16),      # host-precomputed H^T
            jnp.asarray(bmat, dtype=jnp.bfloat16),
            jnp.asarray(valid)]

    for l, (w, b) in enumerate(params["convs"]):
        fan_in = int(w.shape[0])
        fin_pad = fan_in if l == 0 else HID_PAD
        w_pad = np.zeros((fin_pad, HID_PAD), np.float32)
        w_pad[:fan_in, :hidden] = np.asarray(w)
        b_pad = np.zeros((1, HID_PAD), np.float32)
        b_pad[:, :hidden] = np.asarray(b)
        mw_pad = np.zeros((HID_PAD, 1), np.float32)        # MLP slice for this layer
        mw_pad[:hidden, :] = np.asarray(mlp_w)[l * hidden:(l + 1) * hidden, :]
        args += [jnp.asarray(w_pad), jnp.asarray(b_pad), jnp.asarray(mw_pad)]
    args += [jnp.asarray(mlp_b, jnp.float32)]

    # ---- cost / VMEM sizing from the actual buffers ----
    in_bytes = int(sum(int(a.size) * a.dtype.itemsize for a in args))
    out_bytes = E_pad * OUT_LANES * 4
    flops = 0
    fan = x_pad.shape[1]
    for _ in range(num_layers):
        flops += 2 * E_pad * fan * HID_PAD          # lin: X W
        flops += 2 * M_pad * E_pad * HID_PAD        # H^T (XW)
        flops += 2 * E_pad * M_pad * HID_PAD        # H (B^-1 H^T X W)
        flops += 2 * E_pad * HID_PAD                # fused MLP column
        fan = HID_PAD
    transcendentals = 3 * E_pad + M_pad             # exp + reciprocals
    work_bytes = 4 * (6 * E_pad * HID_PAD + 3 * M_pad * HID_PAD + 2 * E_pad * M_pad)
    vmem_limit = int(min(100 * 2**20,
                         max(16 * 2**20,
                             2 * (in_bytes + out_bytes) + work_bytes + (2 << 20))))

    kernel = make_explainer_kernel(num_layers)
    out = pl.pallas_call(
        kernel,
        out_shape=jax.ShapeDtypeStruct((E_pad, OUT_LANES), jnp.float32),
        in_specs=[pl.BlockSpec(memory_space=pltpu.MemorySpace.VMEM)] * len(args),
        out_specs=pl.BlockSpec(memory_space=pltpu.MemorySpace.VMEM),
        compiler_params=pltpu.CompilerParams(vmem_limit_bytes=vmem_limit),
        cost_estimate=pl.CostEstimate(flops=int(flops),
                                      transcendentals=int(transcendentals),
                                      bytes_accessed=int(in_bytes + out_bytes)),
    )(*args)
    return out[:E, :1], edge_batch


# ----------------------------------------------------------------------------
if __name__ == "__main__":
    key = jax.random.PRNGKey(0)
    input_dim = 8
    input_dim_edge = 0          # -> use_edge_attr = False (edge_attr derived from x)
    hidden_dim = 32
    num_gc_layers = 2

    # two small graphs: nodes 0-3 (graph 0) and 4-7 (graph 1), 12 directed edges
    num_nodes = 8
    edge_index = np.array([
        [0, 1, 1, 2, 2, 3, 4, 5, 5, 6, 6, 7],
        [1, 0, 2, 1, 3, 2, 5, 4, 6, 5, 7, 6],
    ], dtype=np.int32)
    batch = np.array([0, 0, 0, 0, 1, 1, 1, 1], dtype=np.int32)

    kx, kp = jax.random.split(key)
    x = jax.random.normal(kx, (num_nodes, input_dim), jnp.float32)
    params = init_params(kp, input_dim, input_dim_edge, hidden_dim, num_gc_layers)

    edge_prob, edge_batch = explainer_hgnn_forward(params, x, edge_index, None, batch)
    edge_prob = jax.block_until_ready(edge_prob)

    ep = np.asarray(edge_prob)
    assert ep.shape == (edge_index.shape[1], 1)
    assert np.isfinite(ep).all()
    assert (ep >= 0.0).all()
    # grouped softmax sanity: probabilities sum to ~1 within each graph's edge group
    # (tolerance accounts for the EUP approx reciprocal in the denominator)
    for g in range(int(batch.max()) + 1):
        s = ep[edge_batch == g].sum()
        assert abs(s - 1.0) < 1e-2, s
    print("KERNEL_OK")
</pallas_src>

<mosaic_0001>
module attributes {stable_mosaic.version = 11 : i64} {
  func.func @kernel(%arg0: memref<128x8xf32, #tpu.memory_space<vmem>>, %arg1: memref<128x128xbf16, #tpu.memory_space<vmem>>, %arg2: memref<128x128xbf16, #tpu.memory_space<vmem>>, %arg3: memref<128x2xbf16, #tpu.memory_space<vmem>>, %arg4: memref<128x1xf32, #tpu.memory_space<vmem>>, %arg5: memref<8x128xf32, #tpu.memory_space<vmem>>, %arg6: memref<1x128xf32, #tpu.memory_space<vmem>>, %arg7: memref<128x1xf32, #tpu.memory_space<vmem>>, %arg8: memref<128x128xf32, #tpu.memory_space<vmem>>, %arg9: memref<1x128xf32, #tpu.memory_space<vmem>>, %arg10: memref<128x1xf32, #tpu.memory_space<vmem>>, %arg11: memref<1x1xf32, #tpu.memory_space<vmem>>, %arg12: memref<128x128xf32, #tpu.memory_space<vmem>>) attributes {dimension_semantics = [], scalar_prefetch = 0 : i64, scratch_operands = 0 : i64, tpu.core_type = #tpu.core_type<tc>} {
    %c0 = arith.constant 0 : index
    %c0_0 = arith.constant 0 : index
    %0 = vector.load %arg1[%c0, %c0_0] : memref<128x128xbf16, #tpu.memory_space<vmem>>, vector<128x128xbf16>
    %c0_1 = arith.constant 0 : index
    %c0_2 = arith.constant 0 : index
    %1 = vector.load %arg2[%c0_1, %c0_2] : memref<128x128xbf16, #tpu.memory_space<vmem>>, vector<128x128xbf16>
    %c0_3 = arith.constant 0 : index
    %c0_4 = arith.constant 0 : index
    %2 = vector.load %arg4[%c0_3, %c0_4] : memref<128x1xf32, #tpu.memory_space<vmem>>, vector<128x1xf32>
    %c0_5 = arith.constant 0 : index
    %c0_6 = arith.constant 0 : index
    %3 = vector.load %arg0[%c0_5, %c0_6] : memref<128x8xf32, #tpu.memory_space<vmem>>, vector<128x8xf32>
    %4 = arith.extf %0 : vector<128x128xbf16> to vector<128x128xf32>
    %cst = arith.constant dense<0.000000e+00> : vector<128xf32>
    %5 = vector.multi_reduction <add>, %4, %cst [1] : vector<128x128xf32> to vector<128xf32>
    %6 = vector.shape_cast %5 : vector<128xf32> to vector<128x1xf32>
    %7 = arith.extf %1 : vector<128x128xbf16> to vector<128x128xf32>
    %cst_7 = arith.constant dense<0.000000e+00> : vector<128xf32>
    %8 = vector.multi_reduction <add>, %7, %cst_7 [1] : vector<128x128xf32> to vector<128xf32>
    %9 = vector.shape_cast %8 : vector<128xf32> to vector<128x1xf32>
    %cst_8 = arith.constant 0.000000e+00 : f32
    %10 = vector.broadcast %cst_8 : f32 to vector<128x1xf32>
    %11 = arith.cmpf ogt, %6, %10 : vector<128x1xf32>
    %12 = tpu.reciprocal %6 {approx = true} : vector<128x1xf32> -> vector<128x1xf32>
    %cst_9 = arith.constant 0.000000e+00 : f32
    %13 = vector.broadcast %cst_9 : f32 to vector<128x1xf32>
    %14 = arith.select %11, %12, %13 : vector<128x1xi1>, vector<128x1xf32>
    %cst_10 = arith.constant 0.000000e+00 : f32
    %15 = vector.broadcast %cst_10 : f32 to vector<128x1xf32>
    %16 = arith.cmpf ogt, %9, %15 : vector<128x1xf32>
    %17 = tpu.reciprocal %9 {approx = true} : vector<128x1xf32> -> vector<128x1xf32>
    %cst_11 = arith.constant 0.000000e+00 : f32
    %18 = vector.broadcast %cst_11 : f32 to vector<128x1xf32>
    %19 = arith.select %16, %17, %18 : vector<128x1xi1>, vector<128x1xf32>
    %cst_12 = arith.constant 0.000000e+00 : f32
    %20 = vector.broadcast %cst_12 : f32 to vector<128x1xf32>
    %c0_13 = arith.constant 0 : index
    %c0_14 = arith.constant 0 : index
    %21 = vector.load %arg5[%c0_13, %c0_14] : memref<8x128xf32, #tpu.memory_space<vmem>>, vector<8x128xf32>
    %c0_15 = arith.constant 0 : index
    %c0_16 = arith.constant 0 : index
    %22 = vector.load %arg6[%c0_15, %c0_16] : memref<1x128xf32, #tpu.memory_space<vmem>>, vector<1x128xf32>
    %c0_17 = arith.constant 0 : index
    %c0_18 = arith.constant 0 : index
    %23 = vector.load %arg7[%c0_17, %c0_18] : memref<128x1xf32, #tpu.memory_space<vmem>>, vector<128x1xf32>
    %cst_19 = arith.constant dense<0.000000e+00> : vector<128x128xf32>
    %24 = tpu.matmul %3, %21, %cst_19 {dimension_numbers = #tpu.dot_dimension_numbers<[1], [0], [0], [1], [0, 0, 1, 1], [], []>} : vector<128x8xf32>, vector<8x128xf32>, vector<128x128xf32> -> vector<128x128xf32>
    %25 = arith.truncf %24 : vector<128x128xf32> to vector<128x128xbf16>
    %cst_20 = arith.constant dense<0.000000e+00> : vector<128x128xf32>
    %26 = tpu.matmul %1, %25, %cst_20 {dimension_numbers = #tpu.dot_dimension_numbers<[1], [0], [0], [1], [0, 0, 1, 1], [], []>} : vector<128x128xbf16>, vector<128x128xbf16>, vector<128x128xf32> -> vector<128x128xf32>
    %27 = vector.broadcast %19 : vector<128x1xf32> to vector<128x128xf32>
    %28 = arith.mulf %26, %27 : vector<128x128xf32>
    %29 = arith.truncf %28 : vector<128x128xf32> to vector<128x128xbf16>
    %cst_21 = arith.constant dense<0.000000e+00> : vector<128x128xf32>
    %30 = tpu.matmul %0, %29, %cst_21 {dimension_numbers = #tpu.dot_dimension_numbers<[1], [0], [0], [1], [0, 0, 1, 1], [], []>} : vector<128x128xbf16>, vector<128x128xbf16>, vector<128x128xf32> -> vector<128x128xf32>
    %31 = vector.broadcast %14 : vector<128x1xf32> to vector<128x128xf32>
    %32 = arith.mulf %31, %30 : vector<128x128xf32>
    %33 = vector.broadcast %22 : vector<1x128xf32> to vector<128x128xf32>
    %34 = arith.addf %32, %33 : vector<128x128xf32>
    %cst_22 = arith.constant 0.000000e+00 : f32
    %35 = vector.broadcast %cst_22 : f32 to vector<128x128xf32>
    %36 = arith.maximumf %34, %35 : vector<128x128xf32>
    %37 = vector.broadcast %2 : vector<128x1xf32> to vector<128x128xf32>
    %38 = arith.mulf %36, %37 : vector<128x128xf32>
    %cst_23 = arith.constant dense<0.000000e+00> : vector<128x1xf32>
    %39 = tpu.matmul %38, %23, %cst_23 {dimension_numbers = #tpu.dot_dimension_numbers<[1], [0], [0], [1], [0, 0, 1, 1], [], []>} : vector<128x128xf32>, vector<128x1xf32>, vector<128x1xf32> -> vector<128x1xf32>
    %40 = arith.addf %20, %39 : vector<128x1xf32>
    %c0_24 = arith.constant 0 : index
    %c0_25 = arith.constant 0 : index
    %41 = vector.load %arg8[%c0_24, %c0_25] : memref<128x128xf32, #tpu.memory_space<vmem>>, vector<128x128xf32>
    %c0_26 = arith.constant 0 : index
    %c0_27 = arith.constant 0 : index
    %42 = vector.load %arg9[%c0_26, %c0_27] : memref<1x128xf32, #tpu.memory_space<vmem>>, vector<1x128xf32>
    %c0_28 = arith.constant 0 : index
    %c0_29 = arith.constant 0 : index
    %43 = vector.load %arg10[%c0_28, %c0_29] : memref<128x1xf32, #tpu.memory_space<vmem>>, vector<128x1xf32>
    %cst_30 = arith.constant dense<0.000000e+00> : vector<128x128xf32>
    %44 = tpu.matmul %38, %41, %cst_30 {dimension_numbers = #tpu.dot_dimension_numbers<[1], [0], [0], [1], [0, 0, 1, 1], [], []>} : vector<128x128xf32>, vector<128x128xf32>, vector<128x128xf32> -> vector<128x128xf32>
    %45 = arith.truncf %44 : vector<128x128xf32> to vector<128x128xbf16>
    %cst_31 = arith.constant dense<0.000000e+00> : vector<128x128xf32>
    %46 = tpu.matmul %1, %45, %cst_31 {dimension_numbers = #tpu.dot_dimension_numbers<[1], [0], [0], [1], [0, 0, 1, 1], [], []>} : vector<128x128xbf16>, vector<128x128xbf16>, vector<128x128xf32> -> vector<128x128xf32>
    %47 = vector.broadcast %19 : vector<128x1xf32> to vector<128x128xf32>
    %48 = arith.mulf %46, %47 : vector<128x128xf32>
    %49 = arith.truncf %48 : vector<128x128xf32> to vector<128x128xbf16>
    %cst_32 = arith.constant dense<0.000000e+00> : vector<128x128xf32>
    %50 = tpu.matmul %0, %49, %cst_32 {dimension_numbers = #tpu.dot_dimension_numbers<[1], [0], [0], [1], [0, 0, 1, 1], [], []>} : vector<128x128xbf16>, vector<128x128xbf16>, vector<128x128xf32> -> vector<128x128xf32>
    %51 = vector.broadcast %14 : vector<128x1xf32> to vector<128x128xf32>
    %52 = arith.mulf %51, %50 : vector<128x128xf32>
    %53 = vector.broadcast %42 : vector<1x128xf32> to vector<128x128xf32>
    %54 = arith.addf %52, %53 : vector<128x128xf32>
    %cst_33 = arith.constant 0.000000e+00 : f32
    %55 = vector.broadcast %cst_33 : f32 to vector<128x128xf32>
    %56 = arith.maximumf %54, %55 : vector<128x128xf32>
    %57 = vector.broadcast %2 : vector<128x1xf32> to vector<128x128xf32>
    %58 = arith.mulf %56, %57 : vector<128x128xf32>
    %cst_34 = arith.constant dense<0.000000e+00> : vector<128x1xf32>
    %59 = tpu.matmul %58, %43, %cst_34 {dimension_numbers = #tpu.dot_dimension_numbers<[1], [0], [0], [1], [0, 0, 1, 1], [], []>} : vector<128x128xf32>, vector<128x1xf32>, vector<128x1xf32> -> vector<128x1xf32>
    %60 = arith.addf %40, %59 : vector<128x1xf32>
    %c0_35 = arith.constant 0 : index
    %c0_36 = arith.constant 0 : index
    %61 = vector.load %arg11[%c0_35, %c0_36] : memref<1x1xf32, #tpu.memory_space<vmem>>, vector<1x1xf32>
    %62 = vector.broadcast %61 : vector<1x1xf32> to vector<128x1xf32>
    %63 = arith.addf %60, %62 : vector<128x1xf32>
    %c0_37 = arith.constant 0 : index
    %c0_38 = arith.constant 0 : index
    %64 = vector.load %arg3[%c0_37, %c0_38] : memref<128x2xbf16, #tpu.memory_space<vmem>>, vector<128x2xbf16>
    %65 = arith.extf %64 : vector<128x2xbf16> to vector<128x2xf32>
    %cst_39 = arith.constant 0.000000e+00 : f32
    %66 = vector.broadcast %cst_39 : f32 to vector<128x2xf32>
    %67 = arith.cmpf ogt, %65, %66 : vector<128x2xf32>
    %cst_40 = arith.constant -1.000000e+30 : f32
    %68 = vector.shape_cast %63 : vector<128x1xf32> to vector<128x1xf32>
    %69 = vector.broadcast %68 : vector<128x1xf32> to vector<128x2xf32>
    %70 = vector.broadcast %cst_40 : f32 to vector<128x2xf32>
    %71 = arith.select %67, %69, %70 : vector<128x2xi1>, vector<128x2xf32>
    %cst_41 = arith.constant dense<0xFF800000> : vector<2xf32>
    %72 = vector.multi_reduction <maximumf>, %71, %cst_41 [0] : vector<128x2xf32> to vector<2xf32>
    %73 = vector.shape_cast %72 : vector<2xf32> to vector<1x2xf32>
    %74 = vector.broadcast %73 : vector<1x2xf32> to vector<128x2xf32>
    %75 = arith.mulf %65, %74 : vector<128x2xf32>
    %cst_42 = arith.constant dense<0.000000e+00> : vector<128xf32>
    %76 = vector.multi_reduction <add>, %75, %cst_42 [1] : vector<128x2xf32> to vector<128xf32>
    %77 = vector.shape_cast %76 : vector<128xf32> to vector<128x1xf32>
    %78 = arith.subf %63, %77 : vector<128x1xf32>
    %79 = math.exp %78 : vector<128x1xf32>
    %80 = arith.mulf %79, %2 : vector<128x1xf32>
    %81 = vector.broadcast %80 : vector<128x1xf32> to vector<128x2xf32>
    %82 = arith.mulf %65, %81 : vector<128x2xf32>
    %cst_43 = arith.constant dense<0.000000e+00> : vector<2xf32>
    %83 = vector.multi_reduction <add>, %82, %cst_43 [0] : vector<128x2xf32> to vector<2xf32>
    %84 = vector.shape_cast %83 : vector<2xf32> to vector<1x2xf32>
    %85 = vector.broadcast %84 : vector<1x2xf32> to vector<128x2xf32>
    %86 = arith.mulf %65, %85 : vector<128x2xf32>
    %cst_44 = arith.constant dense<0.000000e+00> : vector<128xf32>
    %87 = vector.multi_reduction <add>, %86, %cst_44 [1] : vector<128x2xf32> to vector<128xf32>
    %88 = vector.shape_cast %87 : vector<128xf32> to vector<128x1xf32>
    %cst_45 = arith.constant 1.000000e-16 : f32
    %89 = vector.broadcast %cst_45 : f32 to vector<128x1xf32>
    %90 = arith.addf %88, %89 : vector<128x1xf32>
    %91 = tpu.reciprocal %90 {approx = true} : vector<128x1xf32> -> vector<128x1xf32>
    %92 = arith.mulf %80, %91 : vector<128x1xf32>
    %93 = vector.shape_cast %92 : vector<128x1xf32> to vector<128x1xf32>
    %94 = vector.broadcast %93 : vector<128x1xf32> to vector<128x128xf32>
    %c0_46 = arith.constant 0 : index
    %c0_47 = arith.constant 0 : index
    %95 = vector.load %arg12[%c0_46, %c0_47] : memref<128x128xf32, #tpu.memory_space<vmem>>, vector<128x128xf32>
    tpu.vector_store %arg12[%c0_46, %c0_47], %94 {strides = array<i32>} : memref<128x128xf32, #tpu.memory_space<vmem>>, vector<128x128xf32>,
    return
  }
}

</mosaic_0001>

<bundles_post_ra>
// kernel: tpu_custom_call.1
= control target key start
LH: loop header
LB: loop body
LE: loop exit
PB: predicated region body
PF: predicated region fallthrough
CT: control target
= control target key end

     0   :  { %s4667_s0 = inlined_call_operand.vmem [shape: f32[128,8], index: 0, kind: input, shape index: {}]   ;;  %s4668_s1 = inlined_call_operand.vmem [shape: bf16[128,128], index: 1, kind: input, shape index: {}]   ;;  %s4669_s2 = inlined_call_operand.vmem [shape: bf16[128,128], index: 2, kind: input, shape index: {}]   ;;  %s4670_s3 = inlined_call_operand.vmem [shape: bf16[128,2], index: 3, kind: input, shape index: {}]   ;;  %s4671_s4 = inlined_call_operand.vmem [shape: f32[128,1], index: 4, kind: input, shape index: {}]   ;;  %s4672_s5 = inlined_call_operand.vmem [shape: f32[8,128], index: 5, kind: input, shape index: {}]   ;;  %s4673_s6 = inlined_call_operand.vmem [shape: f32[1,128], index: 6, kind: input, shape index: {}]   ;;  %s4674_s7 = inlined_call_operand.vmem [shape: f32[128,1], index: 7, kind: input, shape index: {}]   ;;  %s4675_s8 = inlined_call_operand.vmem [shape: f32[128,128], index: 8, kind: input, shape index: {}]   ;;  %s4676_s9 = inlined_call_operand.vmem [shape: f32[1,128], index: 9, kind: input, shape index: {}]   ;;  %s4677_s10 = inlined_call_operand.vmem [shape: f32[128,1], index: 10, kind: input, shape index: {}]   ;;  %s4678_s11 = inlined_call_operand.<no memory space> [shape: f32[1,1], index: 11, kind: input, shape index: {}]   ;;  %s4679_s12 = inlined_call_operand.hbm [shape: f32[128,128], index: 12, kind: output, shape index: {}]  }
   0x1   :  { %v17_v0 = vstv %s4678_s11 }
   0x2   :  { %18 = vst [vmem:[#allocation2] sm:$0x1] %v17_v0 }
   0x3   :  { %v301_v1 = vld [vmem:[%s4672_s5] sm:$0xff]  ;;  %vm319_vm0 = vcmask 64512   ;;  %v94_v3 = vld [vmem:[%s4667_s0 + $0x8] sm:$0xff]  ;;  %v95_v4 = vld [vmem:[%s4667_s0 + $0x10] sm:$0xff] }
   0x4   :  { %v93_v2 = vld [vmem:[%s4667_s0] sm:$0xff]  ;;  %2690 = vmatprep.subr.mxu0 %v301_v1  ;;  %v96_v5 = vld [vmem:[%s4667_s0 + $0x18] sm:$0xff] }
   0x5   :  { %2692 = vmatprep.mubr.msk.f32.mxu0 %vm319_vm0, %v93_v2  ;;  %2691 = vmatpush3.msra.mxu0 %v301_v1  ;;  %v97_v6 = vld [vmem:[%s4667_s0 + $0x20] sm:$0xff] }
   0x6   :  { %2693 = vmatmul.mubr.msk.f32.vlgmr.msra.gmra.mrb[0].mxu0 %vm319_vm0, %v94_v3 }
   0x7   :  { %2695 = vmatprep.mubr.msk.f32.mxu0 %vm319_vm0, %v95_v4 }
   0x8   :  { %19 = vsyncpa [#allocation4], 0  ;;  %v98_v7 = vld [vmem:[%s4667_s0 + $0x28] sm:$0xff]  ;;  %v99_v8 = vld [vmem:[%s4667_s0 + $0x30] sm:$0xff] }
   0x9   :  { %v100_v9 = vld [vmem:[%s4667_s0 + $0x38] sm:$0xff]  ;;  %v101_v10 = vld [vmem:[%s4667_s0 + $0x40] sm:$0xff]  ;;  %v102_v11 = vld [vmem:[%s4667_s0 + $0x48] sm:$0xff] }
   0xa   :  { %2696 = vmatmul.mubr.msk.f32.gmra.mrb[2].mxu0 %vm319_vm0, %v96_v5  ;;  %v103_v12 = vld [vmem:[%s4667_s0 + $0x50] sm:$0xff]  ;;  %v104_v13 = vld [vmem:[%s4667_s0 + $0x58] sm:$0xff]  ;;  %v105_v14 = vld [vmem:[%s4667_s0 + $0x60] sm:$0xff] }
   0xb   :  { %2698 = vmatprep.mubr.msk.f32.mxu0 %vm319_vm0, %v97_v6  ;;  %v106_v15 = vld [vmem:[%s4667_s0 + $0x68] sm:$0xff]  ;;  %v107_v16 = vld [vmem:[%s4667_s0 + $0x70] sm:$0xff]  ;;  %v108_v17 = vld [vmem:[%s4667_s0 + $0x78] sm:$0xff] }
   0xc   :  { %v3488_v18 = vld [vmem:[%s4669_s2] sm:$0xff]   ;;  %v3494_v19 = vld [vmem:[%s4669_s2 + $0x8] sm:$0xff]   ;;  %v3503_v24 = vld [vmem:[%s4669_s2 + $0x10] sm:$0xff]  }
   0xd   :  { %2732 = vmatprep.mubr.bf16.mxu1 %v3488_v18  ;;  %v157_v20 = vunpack.c.l.bf16 %v3488_v18  ;;  %v159_v21 = vunpack.c.l.bf16 %v3494_v19  ;;  %v158_v22 = vunpack.c.h.bf16 %v3488_v18  ;;  %v160_v23 = vunpack.c.h.bf16 %v3494_v19  ;;  %v3510_v27 = vld [vmem:[%s4669_s2 + $0x18] sm:$0xff]   ;;  %v3517_v30 = vld [vmem:[%s4669_s2 + $0x20] sm:$0xff]   ;;  %v3524_v33 = vld [vmem:[%s4669_s2 + $0x28] sm:$0xff]  }
   0xe   :  { %2699 = vmatmul.mubr.msk.f32.gmra.mrb[4].mxu0 %vm319_vm0, %v98_v7  ;;  %v162_v25 = vunpack.c.h.bf16 %v3503_v24  ;;  %v161_v26 = vunpack.c.l.bf16 %v3503_v24  ;;  %v164_v28 = vunpack.c.h.bf16 %v3510_v27  ;;  %v163_v29 = vunpack.c.l.bf16 %v3510_v27  ;;  %v3531_v36 = vld [vmem:[%s4669_s2 + $0x30] sm:$0xff]   ;;  %v3538_v39 = vld [vmem:[%s4669_s2 + $0x38] sm:$0xff]   ;;  %v3545_v42 = vld [vmem:[%s4668_s1] sm:$0xff]  }
   0xf   :  { %2701 = vmatprep.mubr.msk.f32.mxu0 %vm319_vm0, %v99_v8  ;;  %173 = vadd.xlane.f32.xlu0 %v157_v20  ;;  %v166_v31 = vunpack.c.h.bf16 %v3517_v30  ;;  %v165_v32 = vunpack.c.l.bf16 %v3517_v30  ;;  %v168_v34 = vunpack.c.h.bf16 %v3524_v33  ;;  %v167_v35 = vunpack.c.l.bf16 %v3524_v33  ;;  %v3551_v44 = vld [vmem:[%s4668_s1 + $0x8] sm:$0xff]   ;;  %v3557_v46 = vld [vmem:[%s4668_s1 + $0x10] sm:$0xff]   ;;  %v3563_v48 = vld [vmem:[%s4668_s1 + $0x18] sm:$0xff]  }
  0x10   :  { %177 = vadd.xlane.f32.xlu1 %v159_v21  ;;  %v170_v37 = vunpack.c.h.bf16 %v3531_v36  ;;  %v169_v38 = vunpack.c.l.bf16 %v3531_v36  ;;  %v172_v40 = vunpack.c.h.bf16 %v3538_v39  ;;  %v171_v41 = vunpack.c.l.bf16 %v3538_v39  ;;  %v3569_v50 = vld [vmem:[%s4668_s1 + $0x20] sm:$0xff]   ;;  %v3575_v52 = vld [vmem:[%s4668_s1 + $0x28] sm:$0xff]  }
  0x11   :  { %v109_v43 = vunpack.c.l.bf16 %v3545_v42  ;;  %v111_v45 = vunpack.c.l.bf16 %v3551_v44  ;;  %v113_v47 = vunpack.c.l.bf16 %v3557_v46  ;;  %v115_v49 = vunpack.c.l.bf16 %v3563_v48 }
  0x12   :  { %2702 = vmatmul.mubr.msk.f32.gmra.mrb[6].mxu0 %vm319_vm0, %v100_v9  ;;  %v117_v51 = vunpack.c.l.bf16 %v3569_v50  ;;  %v119_v53 = vunpack.c.l.bf16 %v3575_v52  ;;  %v110_v20 = vunpack.c.h.bf16 %v3545_v42  ;;  %v112_v21 = vunpack.c.h.bf16 %v3551_v44 }
  0x13   :  { %2704 = vmatprep.mubr.msk.f32.mxu0 %vm319_vm0, %v101_v10  ;;  %175 = vadd.xlane.f32.xlu0 %v158_v22  ;;  %v114_v22 = vunpack.c.h.bf16 %v3557_v46 }
  0x14   :  { %179 = vadd.xlane.f32.xlu1 %v160_v23  ;;  %v116_v23 = vunpack.c.h.bf16 %v3563_v48 }
  0x16   :  { %2705 = vmatmul.mubr.msk.f32.gmra.mrb[8].mxu0 %vm319_vm0, %v102_v11 }
  0x17   :  { %2707 = vmatprep.mubr.msk.f32.mxu0 %vm319_vm0, %v103_v12  ;;  %181 = vadd.xlane.f32.xlu0 %v161_v26  ;;  %v3603_v26 = vld [vmem:[%s4668_s1 + $0x38] sm:$0xff]  }
  0x18   :  { %183 = vadd.xlane.f32.xlu1 %v162_v25  ;;  %v118_v25 = vunpack.c.h.bf16 %v3569_v50  ;;  %4709 = vst [vmem:[#allocation6_spill] sm:$0xff] %v3603_v26 }
  0x1a   :  { %2708 = vmatmul.mubr.msk.f32.gmra.mrb[10].mxu0 %vm319_vm0, %v104_v13 }
  0x1b   :  { %2710 = vmatprep.mubr.msk.f32.mxu0 %vm319_vm0, %v105_v14  ;;  %185 = vadd.xlane.f32.xlu0 %v163_v29  ;;  %v3588_v14 = vld [vmem:[%s4668_s1 + $0x30] sm:$0xff]   ;;  %v124_v29 = vunpack.c.h.bf16 %v3603_v26 }
  0x1c   :  { %187 = vadd.xlane.f32.xlu1 %v164_v28  ;;  %v120_v28 = vunpack.c.h.bf16 %v3575_v52 }
  0x1e   :  { %2711 = vmatmul.mubr.msk.f32.gmra.mrb[12].mxu0 %vm319_vm0, %v106_v15  ;;  %v121_v15 = vunpack.c.l.bf16 %v3588_v14 }
  0x1f   :  { %2713 = vmatprep.mubr.msk.f32.mxu0 %vm319_vm0, %v107_v16  ;;  %189 = vadd.xlane.f32.xlu0 %v165_v32  ;;  %v3346_v16 = vmov 0   ;;  %v123_v32 = vunpack.c.l.bf16 %v3603_v26 }
  0x20   :  { %191 = vadd.xlane.f32.xlu1 %v166_v31  ;;  %3144 = vset.pattern.permute.xlu0 %v3346_v16  ;;  %v122_v31 = vunpack.c.h.bf16 %v3588_v14 }
  0x21   :  { %3145 = vset.pattern.permute.xlu1 %v3346_v16 }
  0x22   :  { %2714 = vmatmul.mubr.msk.f32.gmra.mrb[14].mxu0 %vm319_vm0, %v108_v17  ;;  %v77_v17 = vld [vmem:[%s4671_s4] sm:$0xff] }
  0x23   :  { %193 = vadd.xlane.f32.xlu0 %v167_v35  ;;  %2764 = vmatprep.mubr.bf16.mxu0 %v3545_v42  ;;  %v78_v35 = vld [vmem:[%s4671_s4 + $0x8] sm:$0xff] }
  0x24   :  { %195 = vadd.xlane.f32.xlu1 %v168_v34  ;;  %v82_v34 = vld [vmem:[%s4671_s4 + $0x28] sm:$0xff] }
  0x27   :  { %197 = vadd.xlane.f32.xlu0 %v169_v38  ;;  %v79_v38 = vld [vmem:[%s4671_s4 + $0x10] sm:$0xff] }
  0x28   :  { %199 = vadd.xlane.f32.xlu1 %v170_v37  ;;  %v88_v37 = vld [vmem:[%s4671_s4 + $0x58] sm:$0xff] }
  0x2b   :  { %201 = vadd.xlane.f32.xlu0 %v171_v41  ;;  %v80_v41 = vld [vmem:[%s4671_s4 + $0x18] sm:$0xff] }
  0x2c   :  { %203 = vadd.xlane.f32.xlu1 %v172_v40  ;;  %v90_v40 = vld [vmem:[%s4671_s4 + $0x68] sm:$0xff] }
  0x2f   :  { %125 = vadd.xlane.f32.xlu0 %v109_v43  ;;  %v92_v43 = vld [vmem:[%s4671_s4 + $0x78] sm:$0xff] }
  0x30   :  { %127 = vadd.xlane.f32.xlu1 %v110_v20 }
  0x33   :  { %129 = vadd.xlane.f32.xlu0 %v111_v45  ;;  %v81_v45 = vld [vmem:[%s4671_s4 + $0x20] sm:$0xff] }
  0x34   :  { %131 = vadd.xlane.f32.xlu1 %v112_v21 }
  0x37   :  { %133 = vadd.xlane.f32.xlu0 %v113_v47  ;;  %v83_v47 = vld [vmem:[%s4671_s4 + $0x30] sm:$0xff] }
  0x38   :  { %135 = vadd.xlane.f32.xlu1 %v114_v22 }
  0x3b   :  { %137 = vadd.xlane.f32.xlu0 %v115_v49 }
  0x3c   :  { %139 = vadd.xlane.f32.xlu1 %v116_v23 }
  0x3f   :  { %141 = vadd.xlane.f32.xlu0 %v117_v51  ;;  %v84_v51 = vld [vmem:[%s4671_s4 + $0x38] sm:$0xff] }
  0x40   :  { %143 = vadd.xlane.f32.xlu1 %v118_v25 }
  0x43   :  { %145 = vadd.xlane.f32.xlu0 %v119_v53 }
  0x44   :  { %147 = vadd.xlane.f32.xlu1 %v120_v28 }
  0x47   :  { %149 = vadd.xlane.f32.xlu0 %v121_v15  ;;  %v91_v15 = vld [vmem:[%s4671_s4 + $0x70] sm:$0xff] }
  0x48   :  { %151 = vadd.xlane.f32.xlu1 %v122_v31 }
  0x4c   :  { %153 = vadd.xlane.f32.xlu1 %v123_v32 }
  0x5d   :  { %891 = vperm.xlu0 %3144, %v77_v17   ;;  %896 = vperm.xlu1 %3145, %v78_v35  }
  0x61   :  { %901 = vperm.xlu1 %3145, %v79_v38  }
  0x65   :  { %906 = vperm.xlu1 %3145, %v80_v41  }
  0x69   :  { %911 = vperm.xlu1 %3145, %v81_v45  }
  0x6d   :  { %921 = vperm.xlu1 %3145, %v83_v47  }
  0x71   :  { %926 = vperm.xlu1 %3145, %v84_v51  }
  0x7c   :  { %155 = vadd.xlane.f32.xlu0 %v124_v29 }
  0x92   :  { %916 = vperm.xlu0 %3144, %v82_v34  }
  0x96   :  { %946 = vperm.xlu0 %3144, %v88_v37  }
  0x9a   :  { %956 = vperm.xlu0 %3144, %v90_v40  }
  0x9c   :  { %v3641_v53 = vpop.xlane.xlu0 %173 }
  0x9d   :  { %v3636_v49 = vpop.xlane.xlu1 %177  ;;  %3178 = vrcp.f32 %v3641_v53  ;;  %vm253_vm3 = vcmp.gt.f32.partialorder %v3641_v53, 0.0 }
  0x9e   :  { %966 = vperm.xlu0 %3144, %v92_v43   ;;  %3180 = vrcp.f32 %v3636_v49  ;;  %vm255_vm1 = vcmp.gt.f32.partialorder %v3636_v49, 0.0 }
  0xa7   :  { %v3179_v21 = vpop.eup %3178 }
  0xa8   :  { %v3181_v23 = vpop.eup %3180  ;;  %v3718_v40 = vsel %vm253_vm3, %v3179_v21, 0.0 }
  0xa9   :  { %v3713_v34 = vsel %vm255_vm1, %v3181_v23, 0.0 }
  0xd9   :  { %v2694_v54 = vpop.f32.mrb[0].mxu0 }
  0xda   :  { %v434_v55 = vpop.f32.mrb[1].mxu0 }
  0xdb   :  { %v513_v56 = vpack.c.bf16 %v2694_v54, %v434_v55  ;;  %v985_v54 = vld [vmem:[%s4675_s8] sm:$0xff]  ;;  %v986_v55 = vld [vmem:[%s4675_s8 + $0x8] sm:$0xff] }
  0xdd   :  { %v2697_v57 = vpop.f32.mrb[2].mxu0  ;;  %2716 = vmatprep.subr.bf16.mxu1 %v513_v56 }
  0xde   :  { %v444_v58 = vpop.f32.mrb[3].mxu0  ;;  %2717 = vmatpush3.bf16.msra.mxu1 %v513_v56  ;;  %v85_v56 = vld [vmem:[%s4671_s4 + $0x40] sm:$0xff] }
  0xdf   :  { %v514_v59 = vpack.c.bf16 %v2697_v57, %v444_v58  ;;  %v3012_v57 = vpack.c.bf16 %v986_v55, %v985_v54  ;;  %v180_v58 = vpop.xlane.xlu1 %179  ;;  %931 = vperm.xlu1 %3145, %v85_v56  }
  0xe0   :  { %3182 = vrcp.f32 %v180_v58  ;;  %vm256_vm2 = vcmp.gt.f32.partialorder %v180_v58, 0.0 }
  0xe1   :  { %v2700_v60 = vpop.f32.mrb[4].mxu0  ;;  %2718 = vmatprep.subr.bf16.mxu1 %v514_v59 }
  0xe2   :  { %v454_v61 = vpop.f32.mrb[5].mxu0  ;;  %2719 = vmatpush3.bf16.msra.mxu1 %v514_v59  ;;  %v987_v59 = vld [vmem:[%s4675_s8 + $0x10] sm:$0xff] }
  0xe3   :  { %v515_v62 = vpack.c.bf16 %v2700_v60, %v454_v61  ;;  %v988_v60 = vld [vmem:[%s4675_s8 + $0x18] sm:$0xff]  ;;  %v176_v61 = vpop.xlane.xlu0 %175 }
  0xe4   :  { %3184 = vrcp.f32 %v176_v61  ;;  %vm254_vm4 = vcmp.gt.f32.partialorder %v176_v61, 0.0 }
  0xe5   :  { %v2703_v63 = vpop.f32.mrb[6].mxu0  ;;  %2720 = vmatprep.subr.bf16.mxu1 %v515_v62 }
  0xe6   :  { %v464_v0 = vpop.f32.mrb[7].mxu0  ;;  %2721 = vmatpush3.bf16.msra.mxu1 %v515_v62  ;;  %v86_v62 = vld [vmem:[%s4671_s4 + $0x48] sm:$0xff] }
  0xe7   :  { %v516_v1 = vpack.c.bf16 %v2703_v63, %v464_v0  ;;  %v3016_v63 = vpack.c.bf16 %v988_v60, %v987_v59  ;;  %v3661_v0 = vpop.xlane.xlu1 %183  ;;  %936 = vperm.xlu1 %3145, %v86_v62  }
  0xe8   :  { %vm258_vm8 = vcmp.gt.f32.partialorder %v3661_v0, 0.0 }
  0xe9   :  { %v2706_v2 = vpop.f32.mrb[8].mxu0  ;;  %2722 = vmatprep.subr.bf16.mxu1 %v516_v1 }
  0xea   :  { %v474_v3 = vpop.f32.mrb[9].mxu0  ;;  %2723 = vmatpush3.bf16.msra.mxu1 %v516_v1  ;;  %v989_v1 = vld [vmem:[%s4675_s8 + $0x20] sm:$0xff]  ;;  %v3183_v28 = vpop.eup %3182 }
  0xeb   :  { %v517_v4 = vpack.c.bf16 %v2706_v2, %v474_v3  ;;  %v990_v2 = vld [vmem:[%s4675_s8 + $0x28] sm:$0xff]  ;;  %v3669_v3 = vpop.xlane.xlu0 %181  ;;  %v3715_v35 = vsel %vm256_vm2, %v3183_v28, 0.0 }
  0xec   :  { %3186 = vrcp.f32 %v3669_v3  ;;  %vm257_vm6 = vcmp.gt.f32.partialorder %v3669_v3, 0.0 }
  0xed   :  { %v2709_v5 = vpop.f32.mrb[10].mxu0  ;;  %2724 = vmatprep.subr.bf16.mxu1 %v517_v4 }
  0xee   :  { %v484_v6 = vpop.f32.mrb[11].mxu0  ;;  %2725 = vmatpush3.bf16.msra.mxu1 %v517_v4  ;;  %v87_v4 = vld [vmem:[%s4671_s4 + $0x50] sm:$0xff]  ;;  %v3185_v29 = vpop.eup %3184 }
  0xef   :  { %v518_v7 = vpack.c.bf16 %v2709_v5, %v484_v6  ;;  %v3020_v5 = vpack.c.bf16 %v990_v2, %v989_v1  ;;  %941 = vperm.xlu1 %3145, %v87_v4   ;;  %v991_v6 = vld [vmem:[%s4675_s8 + $0x30] sm:$0xff]  ;;  %v3721_v43 = vsel %vm254_vm4, %v3185_v29, 0.0 }
  0xf1   :  { %v2712_v8 = vpop.f32.mrb[12].mxu0  ;;  %2726 = vmatprep.subr.bf16.mxu1 %v518_v7 }
  0xf2   :  { %v494_v9 = vpop.f32.mrb[13].mxu0  ;;  %2727 = vmatpush3.bf16.msra.mxu1 %v518_v7  ;;  %v992_v7 = vld [vmem:[%s4675_s8 + $0x38] sm:$0xff] }
  0xf3   :  { %v519_v10 = vpack.c.bf16 %v2712_v8, %v494_v9  ;;  %v89_v8 = vld [vmem:[%s4671_s4 + $0x60] sm:$0xff]  ;;  %v3024_v9 = vpack.c.bf16 %v992_v7, %v991_v6 }
  0xf4   :  { %951 = vperm.xlu1 %3145, %v89_v8  }
  0xf5   :  { %v2715_v11 = vpop.f32.mrb[14].mxu0  ;;  %2728 = vmatprep.subr.bf16.mxu1 %v519_v10 }
  0xf6   :  { %v504_v12 = vpop.f32.mrb[15].mxu0  ;;  %2729 = vmatpush3.bf16.msra.mxu1 %v519_v10  ;;  %v3683_v10 = vpop.xlane.xlu1 %187 }
  0xf7   :  { %v520_v13 = vpack.c.bf16 %v2715_v11, %v504_v12  ;;  %v3685_v11 = vpop.xlane.xlu0 %185  ;;  %v993_v12 = vld [vmem:[%s4675_s8 + $0x40] sm:$0xff]  ;;  %3188 = vrcp.f32 %v3683_v10  ;;  %v3187_v54 = vpop.eup %3186  ;;  %vm260_vm7 = vcmp.gt.f32.partialorder %v3683_v10, 0.0 }
  0xf8   :  { %961 = vperm.xlu1 %3145, %v91_v15   ;;  %3190 = vrcp.f32 %v3685_v11  ;;  %vm259_vm5 = vcmp.gt.f32.partialorder %v3685_v11, 0.0  ;;  %v3738_v1 = vsel %vm257_vm6, %v3187_v54, 0.0 }
  0xf9   :  { %2730 = vmatprep.subr.bf16.mxu1 %v520_v13  ;;  %3192 = vrcp.f32 %v3661_v0 }
  0xfa   :  { %2731 = vmatpush3.bf16.msra.mxu1 %v520_v13  ;;  %v994_v13 = vld [vmem:[%s4675_s8 + $0x48] sm:$0xff]  ;;  %v3698_v17 = vpop.xlane.xlu1 %191 }
  0xfb   :  { %3013 = vmatprep.subr.bf16.mxu1 %v3012_v57  ;;  %v3028_v16 = vpack.c.bf16 %v994_v13, %v993_v12  ;;  %v3700_v20 = vpop.xlane.xlu0 %189  ;;  %3194 = vrcp.f32 %v3698_v17  ;;  %vm262_vm12 = vcmp.gt.f32.partialorder %v3698_v17, 0.0 }
  0xfc   :  { %vm261_vm11 = vcmp.gt.f32.partialorder %v3700_v20, 0.0 }
  0xfd   :  { %2733 = vmatmul.mubr.bf16.vlgmr.msra.gmra.mrb[0].mxu1 %v3494_v19 }
  0xfe   :  { %2736 = vmatprep.mubr.bf16.mxu1 %v3503_v24  ;;  %3015 = vmatpush3.bf16.msra.mxu1 %v3012_v57  ;;  %v3705_v22 = vpop.xlane.xlu1 %195 }
  0xff   :  { %3017 = vmatprep.subr.bf16.mxu1 %v3016_v63  ;;  %v3708_v25 = vpop.xlane.xlu0 %193  ;;  %3196 = vrcp.f32 %v3705_v22  ;;  %vm264_vm10 = vcmp.gt.f32.partialorder %v3705_v22, 0.0 }
 0x100   :  { %3198 = vrcp.f32 %v3708_v25  ;;  %vm263_vm9 = vcmp.gt.f32.partialorder %v3708_v25, 0.0 }
 0x101   :  { %v3189_v56 = vpop.eup %3188  ;;  %3200 = vrcp.f32 %v3700_v20 }
 0x102   :  { %3019 = vmatpush3.bf16.msra.mxu1 %v3016_v63  ;;  %v3723_v47 = vpop.xlane.xlu1 %199  ;;  %v3191_v58 = vpop.eup %3190  ;;  %v3740_v4 = vsel %vm260_vm7, %v3189_v56, 0.0 }
 0x103   :  { %3021 = vmatprep.subr.bf16.mxu1 %v3020_v5  ;;  %v3728_v53 = vpop.xlane.xlu0 %197  ;;  %v3193_v59 = vpop.eup %3192  ;;  %v3736_v63 = vsel %vm259_vm5, %v3191_v58, 0.0  ;;  %3202 = vrcp.f32 %v3723_v47  ;;  %vm266_vm0 = vcmp.gt.f32.partialorder %v3723_v47, 0.0 }
 0x104   :  { %v3745_v7 = vsel %vm258_vm8, %v3193_v59, 0.0  ;;  %vm265_vm15 = vcmp.gt.f32.partialorder %v3728_v53, 0.0 }
 0x105   :  { %2737 = vmatmul.mubr.bf16.gmra.mrb[4].mxu1 %v3510_v27  ;;  %v3195_v8 = vpop.eup %3194 }
 0x106   :  { %2740 = vmatprep.mubr.bf16.mxu1 %v3517_v30  ;;  %3023 = vmatpush3.bf16.msra.mxu1 %v3020_v5  ;;  %v204_v61 = vpop.xlane.xlu1 %203 }
 0x107   :  { %3025 = vmatprep.subr.bf16.mxu1 %v3024_v9  ;;  %v202_v2 = vpop.xlane.xlu0 %201  ;;  %3204 = vrcp.f32 %v204_v61  ;;  %vm268_vm14 = vcmp.gt.f32.partialorder %v204_v61, 0.0 }
 0x108   :  { %3206 = vrcp.f32 %v202_v2  ;;  %vm267_vm13 = vcmp.gt.f32.partialorder %v202_v2, 0.0 }
 0x109   :  { %v3197_v12 = vpop.eup %3196  ;;  %3208 = vrcp.f32 %v3728_v53 }
 0x10a   :  { %3027 = vmatpush3.bf16.msra.mxu1 %v3024_v9  ;;  %v3199_v15 = vpop.eup %3198  ;;  %v3756_v29 = vsel %vm264_vm10, %v3197_v12, 0.0  ;;  %v998_v12 = vld [vmem:[%s4675_s8 + $0x68] sm:$0xff] }
 0x10b   :  { %3029 = vmatprep.subr.bf16.mxu1 %v3028_v16  ;;  %v3754_v28 = vsel %vm263_vm9, %v3199_v15, 0.0  ;;  %v1000_v15 = vld [vmem:[%s4675_s8 + $0x78] sm:$0xff] }
 0x10d   :  { %2741 = vmatmul.mubr.bf16.gmra.mrb[8].mxu1 %v3524_v33 }
 0x10e   :  { %2744 = vmatprep.mubr.bf16.mxu1 %v3531_v36  ;;  %3031 = vmatpush3.bf16.msra.mxu1 %v3028_v16  ;;  %v3201_v16 = vpop.eup %3200 }
 0x10f   :  { %v3759_v25 = vsel %vm261_vm11, %v3201_v16, 0.0 }
 0x115   :  { %2745 = vmatmul.mubr.bf16.gmra.mrb[12].mxu1 %v3538_v39 }
 0x1d0   :  { %v2734_v31 = vpop.f32.mrb[0].mxu1 }
 0x1d1   :  { %v603_v32 = vpop.f32.mrb[1].mxu1  ;;  %v668_v38 = vmul.f32 %v2734_v31, %v3713_v34 }
 0x1d2   :  { %v2735_v37 = vpop.f32.mrb[2].mxu1  ;;  %v666_v49 = vmul.f32 %v603_v32, %v3718_v40 }
 0x1d3   :  { %v669_v41 = vmul.f32 %v2735_v37, %v3715_v35  ;;  %v606_v45 = vpop.f32.mrb[3].mxu1  ;;  %v3762_v37 = vsel %vm262_vm12, %v3195_v8, 0.0  ;;  %v995_v8 = vld [vmem:[%s4675_s8 + $0x50] sm:$0xff] }
 0x1d4   :  { %v667_v51 = vmul.f32 %v606_v45, %v3721_v43 }
 0x1d5   :  { %v683_v55 = vpack.c.bf16 %v669_v41, %v668_v38  ;;  %v3203_v41 = vpop.eup %3202 }
 0x1d6   :  { %v682_v57 = vpack.c.bf16 %v667_v51, %v666_v49  ;;  %v3205_v49 = vpop.eup %3204  ;;  %v3776_v2 = vsel %vm266_vm0, %v3203_v41, 0.0 }
 0x1d7   :  { %v3207_v54 = vpop.eup %3206  ;;  %v3770_v59 = vsel %vm268_vm14, %v3205_v49, 0.0 }
 0x1d8   :  { %v2738_v60 = vpop.f32.mrb[4].mxu1  ;;  %2748 = vmatprep.subr.bf16.mxu0 %v682_v57  ;;  %v3768_v58 = vsel %vm267_vm13, %v3207_v54, 0.0 }
 0x1d9   :  { %v619_v62 = vpop.f32.mrb[5].mxu1  ;;  %2749 = vmatpush3.bf16.msra.mxu0 %v682_v57  ;;  %v672_v3 = vmul.f32 %v2738_v60, %v3736_v63 }
 0x1da   :  { %v2739_v5 = vpop.f32.mrb[6].mxu1  ;;  %2750 = vmatprep.subr.bf16.mxu0 %v683_v55  ;;  %v670_v9 = vmul.f32 %v619_v62, %v3738_v1 }
 0x1db   :  { %v673_v6 = vmul.f32 %v2739_v5, %v3740_v4  ;;  %v622_v0 = vpop.f32.mrb[7].mxu1 }
 0x1dc   :  { %v671_v10 = vmul.f32 %v622_v0, %v3745_v7 }
 0x1dd   :  { %v685_v11 = vpack.c.bf16 %v673_v6, %v672_v3  ;;  %2751 = vmatpush3.bf16.msra.mxu0 %v683_v55  ;;  %v3209_v55 = vpop.eup %3208 }
 0x1de   :  { %v684_v13 = vpack.c.bf16 %v671_v10, %v670_v9  ;;  %v3773_v5 = vsel %vm265_vm15, %v3209_v55, 0.0  ;;  %v996_v9 = vld [vmem:[%s4675_s8 + $0x58] sm:$0xff] }
 0x1df   :  { %v3032_v10 = vpack.c.bf16 %v996_v9, %v995_v8  ;;  %v3844_v9 = vld [vmem:[%s4673_s6] ss:$0 sm:$0xff] }
 0x1e0   :  { %v2742_v21 = vpop.f32.mrb[8].mxu1  ;;  %2752 = vmatprep.subr.bf16.mxu0 %v684_v13 }
 0x1e1   :  { %v635_v23 = vpop.f32.mrb[9].mxu1  ;;  %2753 = vmatpush3.bf16.msra.mxu0 %v684_v13  ;;  %v676_v32 = vmul.f32 %v2742_v21, %v3754_v28  ;;  %3033 = vmatprep.subr.bf16.mxu1 %v3032_v10  ;;  %v999_v13 = vld [vmem:[%s4675_s8 + $0x70] sm:$0xff]  ;;  %v128_v21 = vpop.xlane.xlu1 %127 }
 0x1e2   :  { %v2743_v31 = vpop.f32.mrb[10].mxu1  ;;  %2754 = vmatprep.subr.bf16.mxu0 %v685_v11  ;;  %v674_v20 = vmul.f32 %v635_v23, %v3759_v25  ;;  %3035 = vmatpush3.bf16.msra.mxu1 %v3032_v10  ;;  %v3040_v16 = vpack.c.bf16 %v1000_v15, %v999_v13  ;;  %vm206_vm4 = vcmp.gt.f32.partialorder %v128_v21, 0.0 }
 0x1e3   :  { %v677_v22 = vmul.f32 %v2743_v31, %v3756_v29  ;;  %v638_v38 = vpop.f32.mrb[11].mxu1 }
 0x1e4   :  { %v675_v17 = vmul.f32 %v638_v38, %v3762_v37 }
 0x1e5   :  { %v687_v45 = vpack.c.bf16 %v677_v22, %v676_v32  ;;  %2755 = vmatpush3.bf16.msra.mxu0 %v685_v11  ;;  %v997_v11 = vld [vmem:[%s4675_s8 + $0x60] sm:$0xff]  ;;  %v132_v23 = vpop.xlane.xlu1 %131 }
 0x1e6   :  { %v686_v51 = vpack.c.bf16 %v675_v17, %v674_v20  ;;  %v126_v17 = vpop.xlane.xlu0 %125  ;;  %vm208_vm3 = vcmp.gt.f32.partialorder %v132_v23, 0.0 }
 0x1e7   :  { %vm205_vm2 = vcmp.gt.f32.partialorder %v126_v17, 0.0 }
 0x1e8   :  { %v2746_v56 = vpop.f32.mrb[12].mxu1  ;;  %2756 = vmatprep.subr.bf16.mxu0 %v686_v51 }
 0x1e9   :  { %v651_v57 = vpop.f32.mrb[13].mxu1  ;;  %2757 = vmatpush3.bf16.msra.mxu0 %v686_v51  ;;  %v680_v62 = vmul.f32 %v2746_v56, %v3768_v58  ;;  %v3806_v31 = vpop.xlane.xlu1 %135 }
 0x1ea   :  { %v2747_v60 = vpop.f32.mrb[14].mxu1  ;;  %2758 = vmatprep.subr.bf16.mxu0 %v687_v45  ;;  %v678_v53 = vmul.f32 %v651_v57, %v3773_v5  ;;  %vm210_vm8 = vcmp.gt.f32.partialorder %v3806_v31, 0.0 }
 0x1eb   :  { %v681_v61 = vmul.f32 %v2747_v60, %v3770_v59  ;;  %v654_v3 = vpop.f32.mrb[15].mxu1 }
 0x1ec   :  { %v679_v47 = vmul.f32 %v654_v3, %v3776_v2 }
 0x1ed   :  { %v689_v6 = vpack.c.bf16 %v681_v61, %v680_v62  ;;  %2759 = vmatpush3.bf16.msra.mxu0 %v687_v45  ;;  %v3808_v32 = vpop.xlane.xlu1 %139  ;;  %v130_v45 = vpop.xlane.xlu0 %129 }
 0x1ee   :  { %v688_v0 = vpack.c.bf16 %v679_v47, %v678_v53  ;;  %3210 = vrcp.f32 %v130_v45  ;;  %vm207_vm1 = vcmp.gt.f32.partialorder %v130_v45, 0.0  ;;  %vm212_vm7 = vcmp.gt.f32.partialorder %v3808_v32, 0.0 }
 0x1ef   :  { %3212 = vrcp.f32 %v126_v17 }
 0x1f0   :  { %2760 = vmatprep.subr.bf16.mxu0 %v688_v0  ;;  %3214 = vrcp.f32 %v132_v23 }
 0x1f1   :  { %2761 = vmatpush3.bf16.msra.mxu0 %v688_v0  ;;  %v3810_v22 = vpop.xlane.xlu1 %143  ;;  %v3820_v51 = vpop.xlane.xlu0 %133  ;;  %3216 = vrcp.f32 %v128_v21 }
 0x1f2   :  { %2762 = vmatprep.subr.bf16.mxu0 %v689_v6  ;;  %vm209_vm6 = vcmp.gt.f32.partialorder %v3820_v51, 0.0  ;;  %vm214_vm12 = vcmp.gt.f32.partialorder %v3810_v22, 0.0 }
 0x1f5   :  { %2763 = vmatpush3.bf16.msra.mxu0 %v689_v6  ;;  %v3812_v38 = vpop.xlane.xlu1 %147  ;;  %v138_v55 = vpop.xlane.xlu0 %137 }
 0x1f6   :  { %3218 = vrcp.f32 %v138_v55  ;;  %vm211_vm5 = vcmp.gt.f32.partialorder %v138_v55, 0.0  ;;  %vm216_vm11 = vcmp.gt.f32.partialorder %v3812_v38, 0.0 }
 0x1f7   :  { %3220 = vrcp.f32 %v3820_v51 }
 0x1f8   :  { %2765 = vmatmul.mubr.bf16.vlgmr.msra.gmra.mrb[16].mxu0 %v3551_v44  ;;  %v3211_v61 = vpop.eup %3210  ;;  %3222 = vrcp.f32 %v3808_v32 }
 0x1f9   :  { %2768 = vmatprep.mubr.bf16.mxu0 %v3557_v46  ;;  %v3814_v20 = vpop.xlane.xlu1 %151  ;;  %v3826_v57 = vpop.xlane.xlu0 %141  ;;  %3224 = vrcp.f32 %v3806_v31  ;;  %v3839_v8 = vsel %vm207_vm1, %v3211_v61, 0.0  ;;  %vm1916_vm1 = vcmask 15360  }
 0x1fa   :  { %v3213_v3 = vpop.eup %3212  ;;  %4712 = vst [vmem:[#allocation9_spill] sm:$0xff] %v3839_v8  ;;  %3226 = vrcp.f32 %v3826_v57  ;;  %vm213_vm9 = vcmp.gt.f32.partialorder %v3826_v57, 0.0  ;;  %vm218_vm0 = vcmp.gt.f32.partialorder %v3814_v20, 0.0 }
 0x1fb   :  { %v3215_v47 = vpop.eup %3214 }
 0x1fc   :  { %v3217_v0 = vpop.eup %3216  ;;  %v3851_v15 = vsel %vm208_vm3, %v3215_v47, 0.0 }
 0x1fd   :  { %v3816_v41 = vpop.xlane.xlu1 %153  ;;  %v3830_v62 = vpop.xlane.xlu0 %145  ;;  %4714 = vst [vmem:[#allocation11_spill] sm:$0xff] %v3851_v15  ;;  %v3856_v45 = vsel %vm206_vm4, %v3217_v0, 0.0 }
 0x1fe   :  { %3228 = vrcp.f32 %v3830_v62  ;;  %4715 = vst [vmem:[#allocation12_spill] sm:$0xff] %v3856_v45  ;;  %vm215_vm10 = vcmp.gt.f32.partialorder %v3830_v62, 0.0  ;;  %vm219_vm14 = vcmp.gt.f32.partialorder %v3816_v41, 0.0 }
 0x1ff   :  { %3230 = vrcp.f32 %v3810_v22 }
 0x200   :  { %2769 = vmatmul.mubr.bf16.gmra.mrb[20].mxu0 %v3563_v48  ;;  %v3219_v47 = vpop.eup %3218  ;;  %3232 = vrcp.f32 %v3812_v38 }
 0x201   :  { %2772 = vmatprep.mubr.bf16.mxu0 %v3569_v50  ;;  %v3818_v49 = vpop.permute.xlu1 %896  ;;  %v3837_v6 = vpop.xlane.xlu0 %149 }
 0x202   :  { %3234 = vrcp.f32 %v3837_v6  ;;  %vm217_vm13 = vcmp.gt.f32.partialorder %v3837_v6, 0.0 }
 0x203   :  { %3236 = vrcp.f32 %v3816_v41 }
 0x205   :  { %v3822_v54 = vpop.permute.xlu1 %901 }
 0x206   :  { %4710 = vst [vmem:[#allocation7_spill] sm:$0xff] %v3822_v54 }
 0x208   :  { %2773 = vmatmul.mubr.bf16.gmra.mrb[24].mxu0 %v3575_v52 }
 0x209   :  { %2776 = vmatprep.mubr.bf16.mxu0 %v3588_v14  ;;  %v3824_v56 = vpop.permute.xlu1 %906 }
 0x20d   :  { %v3828_v60 = vpop.permute.xlu1 %911 }
 0x20e   :  { %4711 = vst [vmem:[#allocation8_spill] sm:$0xff] %v3828_v60 }
 0x210   :  { %2777 = vmatmul.mubr.bf16.gmra.mrb[28].mxu0 %v3603_v26 }
 0x211   :  { %2852 = vmatprep.mubr.bf16.mxu0 %v3488_v18  ;;  %v3036_v18 = vpack.c.bf16 %v998_v12, %v997_v11  ;;  %v3835_v53 = vpop.permute.xlu1 %921  ;;  %v3847_v12 = vsel %vm205_vm2, %v3213_v3, 0.0 }
 0x212   :  { %4713 = vst [vmem:[#allocation10_spill] sm:$0xff] %v3847_v12 }
 0x213   :  { %3037 = vmatprep.subr.bf16.mxu1 %v3036_v18 }
 0x214   :  { %3039 = vmatpush3.bf16.msra.mxu1 %v3036_v18 }
 0x215   :  { %3041 = vmatprep.subr.bf16.mxu1 %v3040_v16  ;;  %v3859_v61 = vpop.permute.xlu1 %926 }
 0x218   :  { %3043 = vmatpush3.bf16.msra.mxu1 %v3040_v16 }
 0x2cb   :  { %v2766_v10 = vpop.f32.mrb[16].mxu0 }
 0x2cc   :  { %v837_v11 = vmul.f32 %v2766_v10, %v3839_v8  ;;  %v772_v18 = vpop.f32.mrb[17].mxu0  ;;  %v3871_v8 = vsel %vm211_vm5, %v3219_v47, 0.0 }
 0x2cd   :  { %v835_v13 = vmul.f32 %v772_v18, %v3847_v12  ;;  %v2767_v16 = vpop.f32.mrb[18].mxu0  ;;  %v3864_v18 = vpop.permute.xlu0 %891  ;;  %4717 = vst [vmem:[#allocation14_spill] sm:$0xff] %v3871_v8 }
 0x2ce   :  { %v859_v23 = vadd.f32 %v3844_v9, %v837_v11  ;;  %v838_v17 = vmul.f32 %v2767_v16, %v3851_v15  ;;  %v775_v21 = vpop.f32.mrb[19].mxu0  ;;  %4716 = vst [vmem:[#allocation13_spill] sm:$0xff] %v3864_v18  ;;  %v3221_v11 = vpop.eup %3220 }
 0x2cf   :  { %v857_v3 = vadd.f32 %v3844_v9, %v835_v13  ;;  %v836_v10 = vmul.f32 %v775_v21, %v3856_v45  ;;  %v3223_v15 = vpop.eup %3222 }
 0x2d0   :  { %v860_v0 = vadd.f32 %v3844_v9, %v838_v17  ;;  %v875_v13 = vmax.f32 %v859_v23, 0.0  ;;  %v3225_v21 = vpop.eup %3224  ;;  %v3879_v17 = vsel %vm209_vm6, %v3221_v11, 0.0  ;;  %v3881_v23 = vpop.permute.xlu1 %931 }
 0x2d1   :  { %v873_v12 = vmax.f32 %v857_v3, 0.0  ;;  %v858_v16 = vadd.f32 %v3844_v9, %v836_v10  ;;  %v3890_v31 = vpop.xlane.xlu0 %155 }
 0x2d2   :  { %v876_v32 = vmax.f32 %v860_v0, 0.0  ;;  %v3897_v0 = vmul.f32 %v3822_v54, %v875_v13  ;;  %3238 = vrcp.f32 %v3890_v31  ;;  %vm220_vm15 = vcmp.gt.f32.partialorder %v3890_v31, 0.0 }
 0x2d3   :  { %v874_v45 = vmax.f32 %v858_v16, 0.0  ;;  %v2770_v26 = vpop.f32.mrb[20].mxu0  ;;  %v3874_v55 = vmul.f32 %v3864_v18, %v873_v12  ;;  %v3887_v16 = vsel %vm212_vm7, %v3223_v15, 0.0  ;;  %3240 = vrcp.f32 %v3814_v20 }
 0x2d4   :  { %v841_v51 = vmul.f32 %v2770_v26, %v3871_v8  ;;  %v788_v3 = vpop.f32.mrb[21].mxu0  ;;  %4720 = vst [vmem:[#allocation17_spill] sm:$0xff] %v3887_v16  ;;  %v3894_v8 = vsel %vm210_vm8, %v3225_v21, 0.0  ;;  %4722 = vst [vmem:[#allocation19_spill] sm:$0xff] %v3897_v0 }
 0x2d5   :  { %4718 = vst [vmem:[#allocation15_spill] sm:$0xff] %v3874_v55  ;;  %v3884_v10 = vmul.f32 %v3818_v49, %v874_v45  ;;  %v839_v47 = vmul.f32 %v788_v3, %v3879_v17  ;;  %v2771_v12 = vpop.f32.mrb[22].mxu0  ;;  %2812 = vmatprep.mubr.f32.mxu1 %v3874_v55  ;;  %4721 = vst [vmem:[#allocation18_spill] sm:$0xff] %v3894_v8  ;;  %v3227_v45 = vpop.eup %3226 }
 0x2d6   :  { %v863_v26 = vadd.f32 %v3844_v9, %v841_v51  ;;  %v842_v11 = vmul.f32 %v2771_v12, %v3887_v16  ;;  %v791_v18 = vpop.f32.mrb[23].mxu0  ;;  %v3229_v55 = vpop.eup %3228  ;;  %v3927_v38 = vsel %vm213_vm9, %v3227_v45, 0.0 }
 0x2d7   :  { %4719 = vst [vmem:[#allocation16_spill] sm:$0xff] %v3884_v10  ;;  %v861_v15 = vadd.f32 %v3844_v9, %v839_v47  ;;  %v840_v3 = vmul.f32 %v791_v18, %v3894_v8  ;;  %2813 = vmatmul.mubr.f32.vlgmr.msra.gmra.mrb[16].mxu1 %v3884_v10  ;;  %v3231_v13 = vpop.eup %3230  ;;  %v3910_v47 = vmul.f32 %v3824_v56, %v876_v32  ;;  %v3913_v8 = vpop.permute.xlu1 %936  ;;  %v3915_v54 = vsel %vm215_vm10, %v3229_v55, 0.0 }
 0x2d8   :  { %2815 = vmatprep.mubr.f32.mxu1 %v3897_v0  ;;  %v864_v51 = vadd.f32 %v3844_v9, %v842_v11  ;;  %v3233_v18 = vpop.eup %3232  ;;  %v879_v10 = vmax.f32 %v863_v26, 0.0  ;;  %4724 = vst [vmem:[#allocation21_spill] sm:$0xff] %v3913_v8  ;;  %v3922_v32 = vpop.permute.xlu0 %916  ;;  %v3938_v57 = vsel %vm214_vm12, %v3231_v13, 0.0 }
 0x2d9   :  { %v877_v21 = vmax.f32 %v861_v15, 0.0  ;;  %v862_v12 = vadd.f32 %v3844_v9, %v840_v3  ;;  %4723 = vst [vmem:[#allocation20_spill] sm:$0xff] %v3910_v47  ;;  %v3235_v11 = vpop.eup %3234  ;;  %v3930_v0 = vsel %vm216_vm11, %v3233_v18, 0.0  ;;  %4727 = vst [vmem:[#allocation24_spill] sm:$0xff] %v3938_v57 }
 0x2da   :  { %v880_v55 = vmax.f32 %v864_v51, 0.0  ;;  %v3941_v51 = vmul.f32 %v3835_v53, %v879_v10 }
 0x2db   :  { %v878_v62 = vmax.f32 %v862_v12, 0.0  ;;  %v2774_v16 = vpop.f32.mrb[24].mxu0  ;;  %2816 = vmatmul.mubr.f32.gmra.mrb[18].mxu1 %v3910_v47  ;;  %v3919_v15 = vmul.f32 %v3828_v60, %v877_v21  ;;  %v3237_v21 = vpop.eup %3236 }
 0x2dc   :  { %v845_v26 = vmul.f32 %v2774_v16, %v3915_v54  ;;  %v804_v3 = vpop.f32.mrb[25].mxu0  ;;  %4728 = vst [vmem:[#allocation25_spill] sm:$0xff] %v3941_v51 }
 0x2dd   :  { %4725 = vst [vmem:[#allocation22_spill] sm:$0xff] %v3919_v15  ;;  %v843_v12 = vmul.f32 %v804_v3, %v3927_v38  ;;  %v2775_v47 = vpop.f32.mrb[26].mxu0  ;;  %2818 = vmatprep.mubr.f32.mxu1 %v3919_v15  ;;  %v3934_v22 = vmul.f32 %v3922_v32, %v878_v62  ;;  %v3239_v62 = vpop.eup %3238 }
 0x2de   :  { %v867_v60 = vadd.f32 %v3844_v9, %v845_v26  ;;  %v846_v16 = vmul.f32 %v2775_v47, %v3930_v0  ;;  %v807_v45 = vpop.f32.mrb[27].mxu0  ;;  %v3949_v47 = vpop.permute.xlu1 %941 }
 0x2df   :  { %4726 = vst [vmem:[#allocation23_spill] sm:$0xff] %v3934_v22  ;;  %v865_v18 = vadd.f32 %v3844_v9, %v843_v12  ;;  %v844_v3 = vmul.f32 %v807_v45, %v3938_v57  ;;  %2819 = vmatmul.mubr.f32.gmra.mrb[20].mxu1 %v3934_v22  ;;  %4729 = vst [vmem:[#allocation26_spill] sm:$0xff] %v3949_v47  ;;  %v3954_v12 = vmul.f32 %v3859_v61, %v880_v55  ;;  %v3241_v45 = vpop.eup %3240 }
 0x2e0   :  { %2821 = vmatprep.mubr.f32.mxu1 %v3941_v51  ;;  %v868_v26 = vadd.f32 %v3844_v9, %v846_v16  ;;  %v883_v22 = vmax.f32 %v867_v60, 0.0  ;;  %v3957_v57 = vsel %vm219_vm14, %v3237_v21, 0.0  ;;  %v3964_v16 = vpop.permute.xlu0 %946 }
 0x2e1   :  { %v881_v13 = vmax.f32 %v865_v18, 0.0  ;;  %v866_v10 = vadd.f32 %v3844_v9, %v844_v3  ;;  %4730 = vst [vmem:[#allocation27_spill] sm:$0xff] %v3954_v12  ;;  %4731 = vst [vmem:[#allocation28_spill] sm:$0xff] %v3964_v16  ;;  %v3969_v18 = vsel %vm217_vm13, %v3235_v11, 0.0  ;;  %v3972_v3 = vsel %vm220_vm15, %v3239_v62, 0.0 }
 0x2e2   :  { %v884_v31 = vmax.f32 %v868_v26, 0.0  ;;  %4732 = vst [vmem:[#allocation29_spill] sm:$0xff] %v3972_v3  ;;  %v3983_v11 = vmul.f32 %v3949_v47, %v883_v22  ;;  %v3985_v26 = vpop.permute.xlu1 %951 }
 0x2e3   :  { %v882_v15 = vmax.f32 %v866_v10, 0.0  ;;  %v2778_v51 = vpop.f32.mrb[28].mxu0  ;;  %2822 = vmatmul.mubr.f32.gmra.mrb[22].mxu1 %v3954_v12  ;;  %v3961_v41 = vmul.f32 %v3881_v23, %v881_v13  ;;  %v3980_v12 = vsel %vm218_vm0, %v3241_v45, 0.0  ;;  %4734 = vst [vmem:[#allocation31_spill] sm:$0xff] %v3985_v26 }
 0x2e4   :  { %v849_v55 = vmul.f32 %v2778_v51, %v3957_v57  ;;  %v820_v60 = vpop.f32.mrb[29].mxu0  ;;  %4733 = vst [vmem:[#allocation30_spill] sm:$0xff] %v3980_v12  ;;  %v3996_v22 = vpop.permute.xlu0 %956 }
 0x2e5   :  { %v847_v21 = vmul.f32 %v820_v60, %v3969_v18  ;;  %v2779_v10 = vpop.f32.mrb[30].mxu0  ;;  %2824 = vmatprep.mubr.f32.mxu1 %v3961_v41  ;;  %v3976_v13 = vmul.f32 %v3913_v8, %v882_v15  ;;  %4735 = vst [vmem:[#allocation32_spill] sm:$0xff] %v3996_v22 }
 0x2e6   :  { %v871_v20 = vadd.f32 %v3844_v9, %v849_v55  ;;  %v850_v51 = vmul.f32 %v2779_v10, %v3972_v3  ;;  %v823_v6 = vpop.f32.mrb[31].mxu0  ;;  %v3994_v10 = vmul.f32 %v3964_v16, %v884_v31 }
 0x2e7   :  { %v869_v62 = vadd.f32 %v3844_v9, %v847_v21  ;;  %v848_v60 = vmul.f32 %v823_v6, %v3980_v12  ;;  %2825 = vmatmul.mubr.f32.gmra.mrb[24].mxu1 %v3976_v13  ;;  %v4002_v6 = vpop.permute.xlu1 %961 }
 0x2e8   :  { %2827 = vmatprep.mubr.f32.mxu1 %v3983_v11  ;;  %v872_v55 = vadd.f32 %v3844_v9, %v850_v51  ;;  %v887_v47 = vmax.f32 %v871_v20, 0.0  ;;  %4736 = vst [vmem:[#allocation33_spill] sm:$0xff] %v4002_v6  ;;  %v4012_v31 = vpop.permute.xlu0 %966 }
 0x2e9   :  { %v885_v15 = vmax.f32 %v869_v62, 0.0  ;;  %v870_v45 = vadd.f32 %v3844_v9, %v848_v60  ;;  %4737 = vst [vmem:[#allocation34_spill] sm:$0xff] %v4012_v31 }
 0x2ea   :  { %v888_v12 = vmax.f32 %v872_v55, 0.0  ;;  %v4009_v9 = vmul.f32 %v4002_v6, %v887_v47 }
 0x2eb   :  { %v886_v3 = vmax.f32 %v870_v45, 0.0  ;;  %2828 = vmatmul.mubr.f32.gmra.mrb[26].mxu1 %v3994_v10  ;;  %v4000_v21 = vmul.f32 %v3985_v26, %v885_v15 }
 0x2ec   :  { %v4016_v20 = vmul.f32 %v4012_v31, %v888_v12 }
 0x2ed   :  { %2830 = vmatprep.mubr.f32.mxu1 %v4000_v21  ;;  %v4006_v51 = vmul.f32 %v3996_v22, %v886_v3 }
 0x2ef   :  { %2831 = vmatmul.mubr.f32.gmra.mrb[28].mxu1 %v4006_v51 }
 0x2f0   :  { %2833 = vmatprep.mubr.f32.mxu1 %v4009_v9 }
 0x2f3   :  { %2834 = vmatmul.mubr.f32.gmra.mrb[30].mxu1 %v4016_v20 }
 0x2f4   :  { %2884 = vmatprep.mubr.bf16.mxu1 %v3545_v42 }
 0x3aa   :  { %v2814_v62 = vpop.f32.mrb[16].mxu1 }
 0x3ab   :  { %v1084_v60 = vpop.f32.mrb[17].mxu1 }
 0x3ac   :  { %v1163_v3 = vpack.c.bf16 %v2814_v62, %v1084_v60 }
 0x3ae   :  { %v2817_v15 = vpop.f32.mrb[18].mxu1  ;;  %2836 = vmatprep.subr.bf16.mxu0 %v1163_v3 }
 0x3af   :  { %v1094_v47 = vpop.f32.mrb[19].mxu1  ;;  %2837 = vmatpush3.bf16.msra.mxu0 %v1163_v3 }
 0x3b0   :  { %v1164_v55 = vpack.c.bf16 %v2817_v15, %v1094_v47 }
 0x3b2   :  { %v2820_v45 = vpop.f32.mrb[20].mxu1  ;;  %2838 = vmatprep.subr.bf16.mxu0 %v1164_v55 }
 0x3b3   :  { %v1104_v6 = vpop.f32.mrb[21].mxu1  ;;  %2839 = vmatpush3.bf16.msra.mxu0 %v1164_v55 }
 0x3b4   :  { %v1165_v22 = vpack.c.bf16 %v2820_v45, %v1104_v6 }
 0x3b6   :  { %v2823_v26 = vpop.f32.mrb[22].mxu1  ;;  %2840 = vmatprep.subr.bf16.mxu0 %v1165_v22 }
 0x3b7   :  { %v1114_v12 = vpop.f32.mrb[23].mxu1  ;;  %2841 = vmatpush3.bf16.msra.mxu0 %v1165_v22  ;;  %v1008_v22 = vld [vmem:[%s4677_s10 + $0x30] sm:$0xff] }
 0x3b8   :  { %v1166_v31 = vpack.c.bf16 %v2823_v26, %v1114_v12 }
 0x3ba   :  { %v2826_v16 = vpop.f32.mrb[24].mxu1  ;;  %2842 = vmatprep.subr.bf16.mxu0 %v1166_v31 }
 0x3bb   :  { %v1124_v42 = vpop.f32.mrb[25].mxu1  ;;  %2843 = vmatpush3.bf16.msra.mxu0 %v1166_v31  ;;  %v1009_v31 = vld [vmem:[%s4677_s10 + $0x38] sm:$0xff] }
 0x3bc   :  { %v1167_v62 = vpack.c.bf16 %v2826_v16, %v1124_v42  ;;  %v3056_v12 = vpack.c.bf16 %v1009_v31, %v1008_v22  ;;  %v1010_v42 = vld [vmem:[%s4677_s10 + $0x40] sm:$0xff] }
 0x3be   :  { %v2829_v60 = vpop.f32.mrb[26].mxu1  ;;  %2844 = vmatprep.subr.bf16.mxu0 %v1167_v62 }
 0x3bf   :  { %v1134_v8 = vpop.f32.mrb[27].mxu1  ;;  %2845 = vmatpush3.bf16.msra.mxu0 %v1167_v62  ;;  %v1011_v62 = vld [vmem:[%s4677_s10 + $0x48] sm:$0xff] }
 0x3c0   :  { %v1168_v3 = vpack.c.bf16 %v2829_v60, %v1134_v8  ;;  %v1002_v8 = vld [vmem:[%s4677_s10] sm:$0xff]  ;;  %v3060_v60 = vpack.c.bf16 %v1011_v62, %v1010_v42 }
 0x3c2   :  { %v2832_v15 = vpop.f32.mrb[28].mxu1  ;;  %2846 = vmatprep.subr.bf16.mxu0 %v1168_v3 }
 0x3c3   :  { %v1144_v47 = vpop.f32.mrb[29].mxu1  ;;  %2847 = vmatpush3.bf16.msra.mxu0 %v1168_v3 }
 0x3c4   :  { %v1169_v6 = vpack.c.bf16 %v2832_v15, %v1144_v47 }
 0x3c6   :  { %v2835_v55 = vpop.f32.mrb[30].mxu1  ;;  %2848 = vmatprep.subr.bf16.mxu0 %v1169_v6 }
 0x3c7   :  { %v1154_v45 = vpop.f32.mrb[31].mxu1  ;;  %2849 = vmatpush3.bf16.msra.mxu0 %v1169_v6 }
 0x3c8   :  { %v1170_v26 = vpack.c.bf16 %v2835_v55, %v1154_v45 }
 0x3ca   :  { %2850 = vmatprep.subr.bf16.mxu0 %v1170_v26 }
 0x3cb   :  { %2851 = vmatpush3.bf16.msra.mxu0 %v1170_v26 }
 0x3ce   :  { %2853 = vmatmul.mubr.bf16.vlgmr.msra.gmra.mrb[32].mxu0 %v3494_v19  ;;  %v1003_v19 = vld [vmem:[%s4677_s10 + $0x8] sm:$0xff] }
 0x3cf   :  { %2856 = vmatprep.mubr.bf16.mxu0 %v3503_v24  ;;  %v1004_v24 = vld [vmem:[%s4677_s10 + $0x10] sm:$0xff] }
 0x3d6   :  { %2857 = vmatmul.mubr.bf16.gmra.mrb[36].mxu0 %v3510_v27  ;;  %v3044_v27 = vpack.c.bf16 %v1003_v19, %v1002_v8 }
 0x3d7   :  { %2860 = vmatprep.mubr.bf16.mxu0 %v3517_v30  ;;  %v1005_v30 = vld [vmem:[%s4677_s10 + $0x18] sm:$0xff] }
 0x3d8   :  { %3045 = vmatprep.subr.bf16.mxu0 %v3044_v27 }
 0x3d9   :  { %3047 = vmatpush3.bf16.msra.mxu0 %v3044_v27 }
 0x3de   :  { %2861 = vmatmul.mubr.bf16.gmra.mrb[40].mxu0 %v3524_v33  ;;  %v3048_v33 = vpack.c.bf16 %v1005_v30, %v1004_v24 }
 0x3df   :  { %2864 = vmatprep.mubr.bf16.mxu0 %v3531_v36  ;;  %v1006_v36 = vld [vmem:[%s4677_s10 + $0x20] sm:$0xff] }
 0x3e0   :  { %3049 = vmatprep.subr.bf16.mxu0 %v3048_v33 }
 0x3e1   :  { %3051 = vmatpush3.bf16.msra.mxu0 %v3048_v33 }
 0x3e6   :  { %2865 = vmatmul.mubr.bf16.gmra.mrb[44].mxu0 %v3538_v39  ;;  %v1007_v39 = vld [vmem:[%s4677_s10 + $0x28] sm:$0xff] }
 0x3e7   :  { %v3052_v16 = vpack.c.bf16 %v1007_v39, %v1006_v36 }
 0x3e9   :  { %3053 = vmatprep.subr.bf16.mxu0 %v3052_v16 }
 0x3ea   :  { %3055 = vmatpush3.bf16.msra.mxu0 %v3052_v16 }
 0x3eb   :  { %3057 = vmatprep.subr.bf16.mxu0 %v3056_v12 }
 0x3ee   :  { %3059 = vmatpush3.bf16.msra.mxu0 %v3056_v12 }
 0x3ef   :  { %3061 = vmatprep.subr.bf16.mxu0 %v3060_v60 }
 0x3f2   :  { %3063 = vmatpush3.bf16.msra.mxu0 %v3060_v60 }
 0x4a1   :  { %v2854_v3 = vpop.f32.mrb[32].mxu0 }
 0x4a2   :  { %v1205_v15 = vpop.f32.mrb[33].mxu0  ;;  %v1270_v6 = vmul.f32 %v2854_v3, %v3713_v34 }
 0x4a3   :  { %v2855_v47 = vpop.f32.mrb[34].mxu0  ;;  %v1268_v26 = vmul.f32 %v1205_v15, %v3718_v40 }
 0x4a4   :  { %v1271_v55 = vmul.f32 %v2855_v47, %v3715_v35  ;;  %v1208_v45 = vpop.f32.mrb[35].mxu0 }
 0x4a5   :  { %v1269_v8 = vmul.f32 %v1208_v45, %v3721_v43 }
 0x4a6   :  { %v1285_v19 = vpack.c.bf16 %v1271_v55, %v1270_v6 }
 0x4a7   :  { %v1284_v24 = vpack.c.bf16 %v1269_v8, %v1268_v26  ;;  %v303_v26 = vld [vmem:[%s4674_s7] sm:$0xff]  ;;  %v304_v8 = vld [vmem:[%s4674_s7 + $0x8] sm:$0xff] }
 0x4a9   :  { %v2858_v27 = vpop.f32.mrb[36].mxu0  ;;  %2868 = vmatprep.subr.bf16.mxu1 %v1284_v24 }
 0x4aa   :  { %v1221_v30 = vpop.f32.mrb[37].mxu0  ;;  %2869 = vmatpush3.bf16.msra.mxu1 %v1284_v24  ;;  %v1274_v36 = vmul.f32 %v2858_v27, %v3736_v63  ;;  %v308_v24 = vld [vmem:[%s4674_s7 + $0x28] sm:$0xff] }
 0x4ab   :  { %v2859_v33 = vpop.f32.mrb[38].mxu0  ;;  %2870 = vmatprep.subr.bf16.mxu1 %v1285_v19  ;;  %v1272_v35 = vmul.f32 %v1221_v30, %v3738_v1  ;;  %v309_v30 = vld [vmem:[%s4674_s7 + $0x30] sm:$0xff] }
 0x4ac   :  { %v1275_v39 = vmul.f32 %v2859_v33, %v3740_v4  ;;  %v1224_v34 = vpop.f32.mrb[39].mxu0  ;;  %v310_v33 = vld [vmem:[%s4674_s7 + $0x38] sm:$0xff] }
 0x4ad   :  { %v1273_v16 = vmul.f32 %v1224_v34, %v3745_v7  ;;  %v313_v34 = vld [vmem:[%s4674_s7 + $0x50] sm:$0xff] }
 0x4ae   :  { %v1287_v40 = vpack.c.bf16 %v1275_v39, %v1274_v36  ;;  %2871 = vmatpush3.bf16.msra.mxu1 %v1285_v19  ;;  %v307_v19 = vld [vmem:[%s4674_s7 + $0x20] sm:$0xff]  ;;  %v312_v36 = vld [vmem:[%s4674_s7 + $0x48] sm:$0xff] }
 0x4af   :  { %v1286_v43 = vpack.c.bf16 %v1273_v16, %v1272_v35  ;;  %v4100_v27 = vpack.c.bf16 %v308_v24, %v307_v19  ;;  %v314_v35 = vld [vmem:[%s4674_s7 + $0x58] sm:$0xff]  ;;  %v316_v16 = vld [vmem:[%s4674_s7 + $0x68] sm:$0xff] }
 0x4b0   :  { %v4744_v24 = vld [vmem:[#allocation14_spill] sm:$0xff] }
 0x4b1   :  { %v2862_v22 = vpop.f32.mrb[40].mxu0  ;;  %2872 = vmatprep.subr.bf16.mxu1 %v1286_v43 }
 0x4b2   :  { %v1237_v31 = vpop.f32.mrb[41].mxu0  ;;  %2873 = vmatpush3.bf16.msra.mxu1 %v1286_v43  ;;  %v1278_v42 = vmul.f32 %v2862_v22, %v3754_v28  ;;  %v317_v43 = vld [vmem:[%s4674_s7 + $0x70] sm:$0xff]  ;;  %v318_v22 = vld [vmem:[%s4674_s7 + $0x78] sm:$0xff] }
 0x4b3   :  { %v2863_v12 = vpop.f32.mrb[42].mxu0  ;;  %2874 = vmatprep.subr.bf16.mxu1 %v1287_v40  ;;  %v1276_v4 = vmul.f32 %v1237_v31, %v3759_v25  ;;  %v4738_v31 = vld [vmem:[#allocation6_spill] sm:$0xff] }
 0x4b4   :  { %v1279_v63 = vmul.f32 %v2863_v12, %v3756_v29  ;;  %v1240_v62 = vpop.f32.mrb[43].mxu0  ;;  %v4190_v12 = vld [vmem:[%s4676_s9] ss:$0 sm:$0xff] }
 0x4b5   :  { %v1277_v1 = vmul.f32 %v1240_v62, %v3762_v37 }
 0x4b6   :  { %v1289_v60 = vpack.c.bf16 %v1279_v63, %v1278_v42  ;;  %2875 = vmatpush3.bf16.msra.mxu1 %v1287_v40  ;;  %v4739_v63 = vld [vmem:[#allocation9_spill] sm:$0xff] }
 0x4b7   :  { %v1288_v7 = vpack.c.bf16 %v1277_v1, %v1276_v4  ;;  %v4740_v1 = vld [vmem:[#allocation10_spill] sm:$0xff] }
 0x4b9   :  { %v2866_v3 = vpop.f32.mrb[44].mxu0  ;;  %2876 = vmatprep.subr.bf16.mxu1 %v1288_v7 }
 0x4ba   :  { %v1253_v15 = vpop.f32.mrb[45].mxu0  ;;  %2877 = vmatpush3.bf16.msra.mxu1 %v1288_v7  ;;  %v1282_v6 = vmul.f32 %v2866_v3, %v3768_v58  ;;  %v4079_v58 = vpack.c.bf16 %v304_v8, %v303_v26 }
 0x4bb   :  { %v2867_v47 = vpop.f32.mrb[46].mxu0  ;;  %2878 = vmatprep.subr.bf16.mxu1 %v1289_v60  ;;  %v1280_v29 = vmul.f32 %v1253_v15, %v3773_v5  ;;  %v306_v5 = vld [vmem:[%s4674_s7 + $0x18] sm:$0xff]  ;;  %v4741_v15 = vld [vmem:[#allocation11_spill] sm:$0xff] }
 0x4bc   :  { %v1283_v28 = vmul.f32 %v2867_v47, %v3770_v59  ;;  %v1256_v55 = vpop.f32.mrb[47].mxu0  ;;  %v305_v59 = vld [vmem:[%s4674_s7 + $0x10] sm:$0xff] }
 0x4bd   :  { %v1281_v25 = vmul.f32 %v1256_v55, %v3776_v2  ;;  %v4088_v2 = vpack.c.bf16 %v306_v5, %v305_v59  ;;  %v4742_v55 = vld [vmem:[#allocation12_spill] sm:$0xff]  ;;  %v4743_v5 = vld [vmem:[#allocation13_spill] sm:$0xff] }
 0x4be   :  { %v1291_v45 = vpack.c.bf16 %v1283_v28, %v1282_v6  ;;  %2879 = vmatpush3.bf16.msra.mxu1 %v1289_v60 }
 0x4bf   :  { %v1290_v37 = vpack.c.bf16 %v1281_v25, %v1280_v29 }
 0x4c1   :  { %2880 = vmatprep.subr.bf16.mxu1 %v1290_v37 }
 0x4c2   :  { %2881 = vmatpush3.bf16.msra.mxu1 %v1290_v37 }
 0x4c3   :  { %2882 = vmatprep.subr.bf16.mxu1 %v1291_v45 }
 0x4c6   :  { %2883 = vmatpush3.bf16.msra.mxu1 %v1291_v45 }
 0x4c7   :  { %3108 = vmatprep.subr.bf16.mxu1 %v4079_v58 }
 0x4c9   :  { %2885 = vmatmul.mubr.bf16.vlgmr.msra.gmra.mrb[32].mxu1 %v3551_v44  ;;  %v4110_v44 = vpack.c.bf16 %v310_v33, %v309_v30 }
 0x4ca   :  { %3116 = vmatpush3.bf16.msra.mxu1 %v4079_v58  ;;  %2888 = vmatprep.mubr.bf16.mxu1 %v3557_v46  ;;  %v311_v46 = vld [vmem:[%s4674_s7 + $0x40] sm:$0xff] }
 0x4cb   :  { %3109 = vmatprep.subr.bf16.mxu1 %v4088_v2  ;;  %v4122_v39 = vpack.c.bf16 %v312_v36, %v311_v46 }
 0x4ce   :  { %3117 = vmatpush3.bf16.msra.mxu1 %v4088_v2 }
 0x4cf   :  { %3110 = vmatprep.subr.bf16.mxu1 %v4100_v27 }
 0x4d1   :  { %2889 = vmatmul.mubr.bf16.gmra.mrb[36].mxu1 %v3563_v48  ;;  %v4132_v48 = vpack.c.bf16 %v314_v35, %v313_v34 }
 0x4d2   :  { %3118 = vmatpush3.bf16.msra.mxu1 %v4100_v27  ;;  %2892 = vmatprep.mubr.bf16.mxu1 %v3569_v50  ;;  %v315_v50 = vld [vmem:[%s4674_s7 + $0x60] sm:$0xff] }
 0x4d3   :  { %3111 = vmatprep.subr.bf16.mxu1 %v4110_v44  ;;  %v4144_v40 = vpack.c.bf16 %v316_v16, %v315_v50  ;;  %v4745_v16 = vld [vmem:[#allocation17_spill] sm:$0xff] }
 0x4d6   :  { %3119 = vmatpush3.bf16.msra.mxu1 %v4110_v44 }
 0x4d7   :  { %3112 = vmatprep.subr.bf16.mxu1 %v4122_v39 }
 0x4d9   :  { %2893 = vmatmul.mubr.bf16.gmra.mrb[40].mxu1 %v3575_v52  ;;  %v4154_v52 = vpack.c.bf16 %v318_v22, %v317_v43 }
 0x4da   :  { %3120 = vmatpush3.bf16.msra.mxu1 %v4122_v39  ;;  %2896 = vmatprep.mubr.bf16.mxu1 %v3588_v14  ;;  %v1012_v14 = vld [vmem:[%s4677_s10 + $0x50] sm:$0xff] }
 0x4db   :  { %3113 = vmatprep.subr.bf16.mxu1 %v4132_v48 }
 0x4de   :  { %3121 = vmatpush3.bf16.msra.mxu1 %v4132_v48 }
 0x4df   :  { %3114 = vmatprep.subr.bf16.mxu1 %v4144_v40 }
 0x4e1   :  { %2897 = vmatmul.mubr.bf16.gmra.mrb[44].mxu1 %v4738_v31  ;;  %v4746_v31 = vld [vmem:[#allocation7_spill] sm:$0xff] }
 0x4e2   :  { %3122 = vmatpush3.bf16.msra.mxu1 %v4144_v40  ;;  %3000 = vmatprep.mubr.f32.mxu1 %v3961_v41  ;;  %v1013_v41 = vld [vmem:[%s4677_s10 + $0x58] sm:$0xff] }
 0x4e3   :  { %3115 = vmatprep.subr.bf16.mxu1 %v4154_v52 }
 0x4e6   :  { %3123 = vmatpush3.bf16.msra.mxu1 %v4154_v52 }
 0x4e9   :  { %3001 = vmatmul.mubr.f32.vlgmr.msra.gmra.mrb[48].mxu1 %v3976_v13  ;;  %v3064_v13 = vpack.c.bf16 %v1013_v41, %v1012_v14 }
 0x4ea   :  { %3003 = vmatprep.mubr.f32.mxu1 %v3983_v11  ;;  %v1014_v11 = vld [vmem:[%s4677_s10 + $0x60] sm:$0xff] }
 0x4eb   :  { %3065 = vmatprep.subr.bf16.mxu0 %v3064_v13 }
 0x4ec   :  { %3067 = vmatpush3.bf16.msra.mxu0 %v3064_v13  ;;  %v4747_v13 = vld [vmem:[#allocation18_spill] sm:$0xff] }
 0x4ed   :  { %3004 = vmatmul.mubr.f32.gmra.mrb[50].mxu1 %v3994_v10  ;;  %v1015_v10 = vld [vmem:[%s4677_s10 + $0x68] sm:$0xff] }
 0x4ee   :  { %3006 = vmatprep.mubr.f32.mxu1 %v4000_v21  ;;  %v3068_v21 = vpack.c.bf16 %v1015_v10, %v1014_v11 }
 0x4f0   :  { %3069 = vmatprep.subr.bf16.mxu0 %v3068_v21 }
 0x4f1   :  { %3007 = vmatmul.mubr.f32.gmra.mrb[52].mxu1 %v4006_v51  ;;  %3071 = vmatpush3.bf16.msra.mxu0 %v3068_v21  ;;  %v1016_v51 = vld [vmem:[%s4677_s10 + $0x70] sm:$0xff] }
 0x4f2   :  { %3009 = vmatprep.mubr.f32.mxu1 %v4009_v9  ;;  %v1017_v9 = vld [vmem:[%s4677_s10 + $0x78] sm:$0xff] }
 0x4f5   :  { %3010 = vmatmul.mubr.f32.gmra.mrb[54].mxu1 %v4016_v20  ;;  %v3072_v20 = vpack.c.bf16 %v1017_v9, %v1016_v51 }
 0x4f7   :  { %3073 = vmatprep.subr.bf16.mxu0 %v3072_v20 }
 0x4f8   :  { %3075 = vmatpush3.bf16.msra.mxu0 %v3072_v20 }
 0x4f9   :  { %3077 = vmatprep.subr.bf16.mxu0 %v4079_v58 }
 0x59c   :  { %v2886_v42 = vpop.f32.mrb[32].mxu1 }
 0x59d   :  { %v1391_v62 = vmul.f32 %v2886_v42, %v4739_v63  ;;  %v1326_v4 = vpop.f32.mrb[33].mxu1  ;;  %v4748_v42 = vld [vmem:[#allocation8_spill] sm:$0xff] }
 0x59e   :  { %v1389_v60 = vmul.f32 %v1326_v4, %v4740_v1  ;;  %v2887_v7 = vpop.f32.mrb[34].mxu1 }
 0x59f   :  { %v1413_v3 = vadd.f32 %v4190_v12, %v1391_v62  ;;  %v1392_v47 = vmul.f32 %v2887_v7, %v4741_v15  ;;  %v1329_v6 = vpop.f32.mrb[35].mxu1 }
 0x5a0   :  { %v1411_v28 = vadd.f32 %v4190_v12, %v1389_v60  ;;  %v1390_v29 = vmul.f32 %v1329_v6, %v4742_v55  ;;  %v4749_v6 = vld [vmem:[#allocation24_spill] sm:$0xff] }
 0x5a1   :  { %v1414_v45 = vadd.f32 %v4190_v12, %v1392_v47  ;;  %v1429_v26 = vmax.f32 %v1413_v3, 0.0 }
 0x5a2   :  { %v1427_v25 = vmax.f32 %v1411_v28, 0.0  ;;  %v1412_v37 = vadd.f32 %v4190_v12, %v1390_v29 }
 0x5a3   :  { %v1430_v46 = vmax.f32 %v1414_v45, 0.0  ;;  %v1445_v14 = vmul.f32 %v1429_v26, %v4746_v31  ;;  %v4755_v31 = vld [vmem:[#allocation31_spill] sm:$0xff] }
 0x5a4   :  { %v1428_v8 = vmax.f32 %v1412_v37, 0.0  ;;  %v2890_v59 = vpop.f32.mrb[36].mxu1  ;;  %v1443_v19 = vmul.f32 %v1427_v25, %v4743_v5 }
 0x5a5   :  { %v1395_v30 = vmul.f32 %v2890_v59, %v4744_v24  ;;  %v1342_v33 = vpop.f32.mrb[37].mxu1  ;;  %v1446_v21 = vmul.f32 %v1430_v46, %v3824_v56  ;;  %v4750_v59 = vld [vmem:[#allocation21_spill] sm:$0xff]  ;;  %v4753_v46 = vld [vmem:[#allocation30_spill] sm:$0xff] }
 0x5a6   :  { %v1444_v36 = vmul.f32 %v1428_v8, %v3818_v49  ;;  %v1393_v34 = vmul.f32 %v1342_v33, %v3879_v17  ;;  %v2891_v35 = vpop.f32.mrb[38].mxu1  ;;  %2932 = vmatprep.mubr.f32.mxu0 %v1443_v19  ;;  %v4751_v19 = vld [vmem:[#allocation29_spill] sm:$0xff] }
 0x5a7   :  { %v1417_v50 = vadd.f32 %v4190_v12, %v1395_v30  ;;  %v1396_v43 = vmul.f32 %v2891_v35, %v4745_v16  ;;  %v1345_v22 = vpop.f32.mrb[39].mxu1  ;;  %v4754_v35 = vld [vmem:[#allocation28_spill] sm:$0xff] }
 0x5a8   :  { %v1415_v41 = vadd.f32 %v4190_v12, %v1393_v34  ;;  %v1394_v11 = vmul.f32 %v1345_v22, %v4747_v13  ;;  %2933 = vmatmul.mubr.f32.vlgmr.msra.gmra.mrb[48].mxu0 %v1444_v36 }
 0x5a9   :  { %2935 = vmatprep.mubr.f32.mxu0 %v1445_v14  ;;  %3079 = vmatpush3.bf16.msra.mxu0 %v4079_v58  ;;  %v1418_v17 = vadd.f32 %v4190_v12, %v1396_v43  ;;  %v1433_v51 = vmax.f32 %v1417_v50, 0.0 }
 0x5aa   :  { %v1431_v49 = vmax.f32 %v1415_v41, 0.0  ;;  %v1416_v10 = vadd.f32 %v4190_v12, %v1394_v11  ;;  %3081 = vmatprep.subr.bf16.mxu0 %v4088_v2 }
 0x5ab   :  { %v1434_v58 = vmax.f32 %v1418_v17, 0.0  ;;  %v1449_v47 = vmul.f32 %v1433_v51, %v3835_v53 }
 0x5ac   :  { %v1432_v9 = vmax.f32 %v1416_v10, 0.0  ;;  %v2894_v20 = vpop.f32.mrb[40].mxu1  ;;  %2936 = vmatmul.mubr.f32.gmra.mrb[50].mxu0 %v1446_v21  ;;  %v1447_v63 = vmul.f32 %v1431_v49, %v4748_v42  ;;  %v4758_v21 = vld [vmem:[#allocation34_spill] sm:$0xff]  ;;  %v4760_v42 = vld [vmem:[#allocation16_spill] sm:$0xff] }
 0x5ad   :  { %v1399_v62 = vmul.f32 %v2894_v20, %v3915_v54  ;;  %v1358_v4 = vpop.f32.mrb[41].mxu1  ;;  %3083 = vmatpush3.bf16.msra.mxu0 %v4088_v2  ;;  %v1450_v55 = vmul.f32 %v1434_v58, %v3859_v61  ;;  %v4762_v58 = vld [vmem:[#allocation20_spill] sm:$0xff] }
 0x5ae   :  { %v1397_v1 = vmul.f32 %v1358_v4, %v3927_v38  ;;  %v2895_v60 = vpop.f32.mrb[42].mxu1  ;;  %2938 = vmatprep.mubr.f32.mxu0 %v1447_v63  ;;  %v1448_v56 = vmul.f32 %v1432_v9, %v3922_v32  ;;  %3085 = vmatprep.subr.bf16.mxu0 %v4100_v27  ;;  %v4759_v9 = vld [vmem:[#allocation15_spill] sm:$0xff] }
 0x5af   :  { %v1421_v7 = vadd.f32 %v4190_v12, %v1399_v62  ;;  %v1400_v3 = vmul.f32 %v2895_v60, %v3930_v0  ;;  %v1361_v15 = vpop.f32.mrb[43].mxu1  ;;  %v4761_v62 = vld [vmem:[#allocation19_spill] sm:$0xff]  ;;  %v4765_v60 = vld [vmem:[#allocation25_spill] sm:$0xff] }
 0x5b0   :  { %v1419_v54 = vadd.f32 %v4190_v12, %v1397_v1  ;;  %v1398_v2 = vmul.f32 %v1361_v15, %v4749_v6  ;;  %2939 = vmatmul.mubr.f32.gmra.mrb[52].mxu0 %v1448_v56  ;;  %v4764_v1 = vld [vmem:[#allocation23_spill] sm:$0xff] }
 0x5b1   :  { %2941 = vmatprep.mubr.f32.mxu0 %v1449_v47  ;;  %3087 = vmatpush3.bf16.msra.mxu0 %v4100_v27  ;;  %v1422_v32 = vadd.f32 %v4190_v12, %v1400_v3  ;;  %v1437_v0 = vmax.f32 %v1421_v7, 0.0  ;;  %v4766_v56 = vld [vmem:[#allocation27_spill] sm:$0xff]  ;;  %v2473_v7 = vld [vmem:[#allocation2] ss:$0 sm:$0xff] }
 0x5b2   :  { %v1435_v38 = vmax.f32 %v1419_v54, 0.0  ;;  %v1420_v28 = vadd.f32 %v4190_v12, %v1398_v2  ;;  %3089 = vmatprep.subr.bf16.mxu0 %v4110_v44 }
 0x5b3   :  { %v1438_v27 = vmax.f32 %v1422_v32, 0.0 }
 0x5b4   :  { %v1436_v29 = vmax.f32 %v1420_v28, 0.0  ;;  %v2898_v53 = vpop.f32.mrb[44].mxu1  ;;  %2942 = vmatmul.mubr.f32.gmra.mrb[54].mxu0 %v1450_v55  ;;  %v1451_v25 = vmul.f32 %v1435_v38, %v3881_v23  ;;  %v4752_v23 = vld [vmem:[#allocation26_spill] sm:$0xff] }
 0x5b5   :  { %v1403_v45 = vmul.f32 %v2898_v53, %v3957_v57  ;;  %v1374_v37 = vpop.f32.mrb[45].mxu1  ;;  %3091 = vmatpush3.bf16.msra.mxu0 %v4110_v44  ;;  %v1453_v33 = vmul.f32 %v1437_v0, %v4752_v23  ;;  %v1454_v50 = vmul.f32 %v1438_v27, %v4754_v35 }
 0x5b6   :  { %v1401_v26 = vmul.f32 %v1374_v37, %v3969_v18  ;;  %v2899_v8 = vpop.f32.mrb[46].mxu1  ;;  %2944 = vmatprep.mubr.f32.mxu0 %v1451_v25  ;;  %v1452_v61 = vmul.f32 %v1436_v29, %v4750_v59  ;;  %3093 = vmatprep.subr.bf16.mxu0 %v4122_v39 }
 0x5b7   :  { %v1425_v5 = vadd.f32 %v4190_v12, %v1403_v45  ;;  %v1404_v24 = vmul.f32 %v2899_v8, %v4751_v19  ;;  %v1377_v30 = vpop.f32.mrb[47].mxu1 }
 0x5b8   :  { %v1423_v57 = vadd.f32 %v4190_v12, %v1401_v26  ;;  %v1402_v44 = vmul.f32 %v1377_v30, %v4753_v46  ;;  %2945 = vmatmul.mubr.f32.gmra.mrb[56].mxu0 %v1452_v61 }
 0x5b9   :  { %2947 = vmatprep.mubr.f32.mxu0 %v1453_v33  ;;  %3095 = vmatpush3.bf16.msra.mxu0 %v4122_v39  ;;  %v1426_v36 = vadd.f32 %v4190_v12, %v1404_v24  ;;  %v1441_v16 = vmax.f32 %v1425_v5, 0.0  ;;  %v4756_v39 = vld [vmem:[#allocation32_spill] sm:$0xff] }
 0x5ba   :  { %v1439_v18 = vmax.f32 %v1423_v57, 0.0  ;;  %v1424_v34 = vadd.f32 %v4190_v12, %v1402_v44  ;;  %3097 = vmatprep.subr.bf16.mxu0 %v4132_v48  ;;  %v4757_v12 = vld [vmem:[#allocation33_spill] sm:$0xff] }
 0x5bb   :  { %v1442_v13 = vmax.f32 %v1426_v36, 0.0  ;;  %v1457_v49 = vmul.f32 %v1441_v16, %v4757_v12 }
 0x5bc   :  { %v1440_v43 = vmax.f32 %v1424_v34, 0.0  ;;  %2948 = vmatmul.mubr.f32.gmra.mrb[58].mxu0 %v1454_v50  ;;  %v3002_v22 = vpop.f32.mrb[48].mxu1  ;;  %v1455_v14 = vmul.f32 %v1439_v18, %v4755_v31 }
 0x5bd   :  { %3099 = vmatpush3.bf16.msra.mxu0 %v4132_v48  ;;  %v1710_v41 = vpop.f32.mrb[49].mxu1  ;;  %v1458_v51 = vmul.f32 %v1442_v13, %v4758_v21 }
 0x5be   :  { %2950 = vmatprep.mubr.f32.mxu0 %v1455_v14  ;;  %v1456_v11 = vmul.f32 %v1440_v43, %v4756_v39  ;;  %3101 = vmatprep.subr.bf16.mxu0 %v4144_v40 }
 0x5c0   :  { %2951 = vmatmul.mubr.f32.gmra.mrb[60].mxu0 %v1456_v11  ;;  %v3005_v17 = vpop.f32.mrb[50].mxu1  ;;  %v2509_v11 = vld [vmem:[%s4670_s3 + $0x20] sm:$0xff]  }
 0x5c1   :  { %2953 = vmatprep.mubr.f32.mxu0 %v1457_v49  ;;  %3103 = vmatpush3.bf16.msra.mxu0 %v4144_v40  ;;  %v1720_v10 = vpop.f32.mrb[51].mxu1  ;;  %v4763_v40 = vld [vmem:[#allocation22_spill] sm:$0xff]  ;;  %v4328_v21 = vunpack.c.h.bf16 %v2509_v11 }
 0x5c2   :  { %3105 = vmatprep.subr.bf16.mxu0 %v4154_v52 }
 0x5c3   :  { %vm1813_vm2 = vcmp.gt.f32.partialorder %v4328_v21, 0.0 }
 0x5c4   :  { %2954 = vmatmul.mubr.f32.gmra.mrb[62].mxu0 %v1458_v51  ;;  %v3008_v48 = vpop.f32.mrb[52].mxu1  ;;  %v4330_v51 = vunpack.c.l.bf16 %v2509_v11 }
 0x5c5   :  { %3107 = vmatpush3.bf16.msra.mxu0 %v4154_v52  ;;  %2988 = vmatprep.mubr.f32.mxu0 %v4759_v9  ;;  %v1730_v20 = vpop.f32.mrb[53].mxu1  ;;  %v2507_v9 = vld [vmem:[%s4670_s3 + $0x10] sm:$0xff]  }
 0x5c6   :  { %vm1812_vm3 = vcmp.gt.f32.partialorder %v4330_v51, 0.0 }
 0x5c8   :  { %2989 = vmatmul.mubr.f32.vlgmr.msra.gmra.mrb[48].mxu0 %v4760_v42  ;;  %v3011_v63 = vpop.f32.mrb[54].mxu1 }
 0x5c9   :  { %2991 = vmatprep.mubr.f32.mxu0 %v4761_v62  ;;  %v1740_v4 = vpop.f32.mrb[55].mxu1 }
 0x5cc   :  { %2992 = vmatmul.mubr.f32.gmra.mrb[50].mxu0 %v4762_v58 }
 0x5cd   :  { %2994 = vmatprep.mubr.f32.mxu0 %v4763_v40 }
 0x5d0   :  { %2995 = vmatmul.mubr.f32.gmra.mrb[52].mxu0 %v4764_v1  ;;  %v2508_v1 = vld [vmem:[%s4670_s3 + $0x18] sm:$0xff]  }
 0x5d1   :  { %2997 = vmatprep.mubr.f32.mxu0 %v4765_v60 }
 0x5d4   :  { %2998 = vmatmul.mubr.f32.gmra.mrb[54].mxu0 %v4766_v56 }
 0x68b   :  { %v2946_v52 = vpop.f32.mrb[56].mxu0 }
 0x68c   :  { %v1716_v3 = vadd.f32 %v3002_v22, %v2946_v52  ;;  %v1565_v15 = vpop.f32.mrb[57].mxu0  ;;  %v4356_v52 = vunpack.c.h.bf16 %v2507_v9 }
 0x68d   :  { %v1711_v47 = vadd.f32 %v1710_v41, %v1565_v15  ;;  %v4365_v15 = vunpack.c.l.bf16 %v2507_v9 }
 0x68e   :  { %v4263_v54 = vadd.f32 %v2473_v7, %v1716_v3  ;;  %vm1809_vm10 = vcmp.gt.f32.partialorder %v4356_v52, 0.0 }
 0x68f   :  { %v4265_v6 = vadd.f32 %v2473_v7, %v1711_v47  ;;  %v2949_v2 = vpop.f32.mrb[58].mxu0  ;;  %vm1808_vm12 = vcmp.gt.f32.partialorder %v4365_v15, 0.0 }
 0x690   :  { %v1726_v38 = vadd.f32 %v3005_v17, %v2949_v2  ;;  %v1575_v32 = vpop.f32.mrb[59].mxu0  ;;  %1867 = vperm.xlu0 %3144, %v4263_v54   ;;  %v2475_v17 = vld [vmem:[%s4670_s3] sm:$0xff]  }
 0x691   :  { %v1721_v28 = vadd.f32 %v1720_v10, %v1575_v32  ;;  %1862 = vperm.xlu1 %3145, %v4265_v6   ;;  %v2510_v10 = vld [vmem:[%s4670_s3 + $0x28] sm:$0xff]   ;;  %v4347_v58 = vunpack.c.l.bf16 %v2475_v17  ;;  %v4372_v32 = vunpack.c.l.bf16 %v2508_v1 }
 0x692   :  { %v4269_v55 = vadd.f32 %v2473_v7, %v1726_v38  ;;  %v4343_v62 = vunpack.c.h.bf16 %v2510_v10  ;;  %v4370_v38 = vunpack.c.h.bf16 %v2508_v1 }
 0x693   :  { %v4271_v0 = vadd.f32 %v2473_v7, %v1721_v28  ;;  %v2952_v29 = vpop.f32.mrb[60].mxu0  ;;  %vm1804_vm7 = vcmp.gt.f32.partialorder %v4347_v58, 0.0  ;;  %vm1810_vm15 = vcmp.gt.f32.partialorder %v4372_v32, 0.0 }
 0x694   :  { %v1736_v53 = vadd.f32 %v3008_v48, %v2952_v29  ;;  %1877 = vperm.xlu0 %3144, %v4269_v55   ;;  %v1585_v25 = vpop.f32.mrb[61].mxu0  ;;  %v2511_v48 = vld [vmem:[%s4670_s3 + $0x30] sm:$0xff]   ;;  %vm1815_vm5 = vcmp.gt.f32.partialorder %v4343_v62, 0.0  ;;  %vm1811_vm14 = vcmp.gt.f32.partialorder %v4370_v38, 0.0 }
 0x695   :  { %v1731_v45 = vadd.f32 %v1730_v20, %v1585_v25  ;;  %1872 = vperm.xlu1 %3145, %v4271_v0   ;;  %v4338_v20 = vunpack.c.h.bf16 %v2475_v17  ;;  %v4352_v60 = vunpack.c.h.bf16 %v2511_v48  ;;  %v4354_v56 = vunpack.c.l.bf16 %v2511_v48 }
 0x696   :  { %v4275_v37 = vadd.f32 %v2473_v7, %v1736_v53 }
 0x697   :  { %v4277_v27 = vadd.f32 %v2473_v7, %v1731_v45  ;;  %v2955_v26 = vpop.f32.mrb[62].mxu0  ;;  %vm1805_vm4 = vcmp.gt.f32.partialorder %v4338_v20, 0.0  ;;  %vm1817_vm8 = vcmp.gt.f32.partialorder %v4352_v60, 0.0  ;;  %vm1816_vm9 = vcmp.gt.f32.partialorder %v4354_v56, 0.0 }
 0x698   :  { %v1746_v8 = vadd.f32 %v3011_v63, %v2955_v26  ;;  %1887 = vperm.xlu0 %3144, %v4275_v37   ;;  %v1595_v59 = vpop.f32.mrb[63].mxu0  ;;  %v2506_v63 = vld [vmem:[%s4670_s3 + $0x8] sm:$0xff]  }
 0x699   :  { %v1741_v61 = vadd.f32 %v1740_v4, %v1595_v59  ;;  %1882 = vperm.xlu1 %3145, %v4277_v27   ;;  %v4345_v4 = vunpack.c.l.bf16 %v2510_v10  ;;  %v4363_v3 = vunpack.c.h.bf16 %v2506_v63  ;;  %v4368_v2 = vunpack.c.l.bf16 %v2506_v63 }
 0x69a   :  { %v4305_v22 = vadd.f32 %v2473_v7, %v1746_v8 }
 0x69b   :  { %v2990_v5 = vpop.f32.mrb[48].mxu0  ;;  %v4307_v31 = vadd.f32 %v2473_v7, %v1741_v61  ;;  %vm1814_vm6 = vcmp.gt.f32.partialorder %v4345_v4, 0.0  ;;  %vm1807_vm11 = vcmp.gt.f32.partialorder %v4363_v3, 0.0  ;;  %vm1806_vm13 = vcmp.gt.f32.partialorder %v4368_v2, 0.0 }
 0x69c   :  { %v4281_v19 = vadd.f32 %v2990_v5, %v2473_v7  ;;  %v1670_v24 = vpop.f32.mrb[49].mxu0 }
 0x69d   :  { %v4283_v30 = vadd.f32 %v2473_v7, %v1670_v24 }
 0x69e   :  { %1827 = vperm.xlu0 %3144, %v4281_v19  }
 0x69f   :  { %1822 = vperm.xlu1 %3145, %v4283_v30   ;;  %v2993_v23 = vpop.f32.mrb[50].mxu0 }
 0x6a0   :  { %v4287_v33 = vadd.f32 %v2993_v23, %v2473_v7  ;;  %v1680_v57 = vpop.f32.mrb[51].mxu0 }
 0x6a1   :  { %v4289_v46 = vadd.f32 %v2473_v7, %v1680_v57 }
 0x6a2   :  { %1837 = vperm.xlu0 %3144, %v4287_v33  }
 0x6a3   :  { %1832 = vperm.xlu1 %3145, %v4289_v46   ;;  %v2996_v44 = vpop.f32.mrb[52].mxu0 }
 0x6a4   :  { %v4293_v18 = vadd.f32 %v2996_v44, %v2473_v7  ;;  %v1690_v36 = vpop.f32.mrb[53].mxu0 }
 0x6a5   :  { %v4295_v34 = vadd.f32 %v2473_v7, %v1690_v36 }
 0x6a6   :  { %1847 = vperm.xlu0 %3144, %v4293_v18  }
 0x6a7   :  { %1842 = vperm.xlu1 %3145, %v4295_v34   ;;  %v2999_v35 = vpop.f32.mrb[54].mxu0 }
 0x6a8   :  { %v4299_v50 = vadd.f32 %v2999_v35, %v2473_v7  ;;  %v1700_v16 = vpop.f32.mrb[55].mxu0 }
 0x6a9   :  { %v4301_v43 = vadd.f32 %v2473_v7, %v1700_v16  ;;  %v2512_v7 = vld [vmem:[%s4670_s3 + $0x38] sm:$0xff]  }
 0x6aa   :  { %1857 = vperm.xlu0 %3144, %v4299_v50   ;;  %v4377_v29 = vunpack.c.h.bf16 %v2512_v7  ;;  %v4391_v24 = vunpack.c.l.bf16 %v2512_v7 }
 0x6ab   :  { %1852 = vperm.xlu1 %3145, %v4301_v43  }
 0x6ac   :  { %vm1819_vm0 = vcmp.gt.f32.partialorder %v4377_v29, 0.0 }
 0x6ae   :  { %1897 = vperm.xlu0 %3144, %v4305_v22  }
 0x6af   :  { %1892 = vperm.xlu1 %3145, %v4307_v31  }
 0x70f   :  { %v1868_v14 = vpop.permute.xlu0 %1867 }
 0x710   :  { %v1863_v41 = vpop.permute.xlu1 %1862  ;;  %v1909_v53 = vsel %vm1813_vm2, %v1868_v14, -1e+30  ;;  %vm1818_vm2 = vcmp.gt.f32.partialorder %v4391_v24, 0.0 }
 0x711   :  { %v1908_v25 = vsel %vm1812_vm3, %v1863_v41, -1e+30  ;;  %v1931_v59 = vsel %vm1916_vm1, %v1909_v53, -inf }
 0x712   :  { %v1929_v23 = vsel %vm1916_vm1, %v1908_v25, -inf }
 0x713   :  { %v4311_v13 = vpop.permute.xlu0 %1877 }
 0x714   :  { %v4313_v39 = vpop.permute.xlu1 %1872  ;;  %v1911_v11 = vsel %vm1815_vm5, %v4311_v13, -1e+30 }
 0x715   :  { %v1910_v17 = vsel %vm1814_vm6, %v4313_v39, -1e+30 }
 0x717   :  { %v4318_v12 = vpop.permute.xlu0 %1887 }
 0x718   :  { %v4320_v49 = vpop.permute.xlu1 %1882 }
 0x719   :  { %v1912_v63 = vsel %vm1816_vm9, %v4320_v49, -1e+30  ;;  %v1935_v49 = vsel %vm1916_vm1, %v1911_v11, -inf }
 0x71d   :  { %v1828_v42 = vpop.permute.xlu0 %1827 }
 0x71e   :  { %v1823_v40 = vpop.permute.xlu1 %1822  ;;  %v1901_v45 = vsel %vm1805_vm4, %v1828_v42, -1e+30  ;;  %v1913_v42 = vsel %vm1817_vm8, %v4318_v12, -1e+30 }
 0x71f   :  { %v1900_v26 = vsel %vm1804_vm7, %v1823_v40, -1e+30  ;;  %v1918_v57 = vsel %vm1916_vm1, %v1901_v45, -inf  ;;  %v1933_v45 = vsel %vm1916_vm1, %v1910_v17, -inf }
 0x720   :  { %v1917_v35 = vsel %vm1916_vm1, %v1900_v26, -inf  ;;  %v1939_v26 = vsel %vm1916_vm1, %v1913_v42, -inf }
 0x721   :  { %v1838_v47 = vpop.permute.xlu0 %1837 }
 0x722   :  { %v1833_v28 = vpop.permute.xlu1 %1832  ;;  %v1903_v16 = vsel %vm1807_vm11, %v1838_v47, -1e+30 }
 0x723   :  { %v1902_v10 = vsel %vm1806_vm13, %v1833_v28, -1e+30  ;;  %v1920_v39 = vsel %vm1916_vm1, %v1903_v16, -inf }
 0x724   :  { %v1919_v53 = vsel %vm1916_vm1, %v1902_v10, -inf }
 0x725   :  { %v1848_v8 = vpop.permute.xlu0 %1847 }
 0x726   :  { %v1905_v61 = vsel %vm1809_vm10, %v1848_v8, -1e+30  ;;  %v1843_v5 = vpop.permute.xlu1 %1842 }
 0x727   :  { %v1923_v44 = vsel %vm1916_vm1, %v1905_v61, -inf  ;;  %v1904_v36 = vsel %vm1808_vm12, %v1843_v5, -1e+30  ;;  %v1937_v61 = vsel %vm1916_vm1, %v1912_v63, -inf }
 0x728   :  { %v1924_v14 = vmax.f32 %v1918_v57, %v1923_v44  ;;  %v1921_v41 = vsel %vm1916_vm1, %v1904_v36, -inf }
 0x729   :  { %v1922_v48 = vmax.f32 %v1917_v35, %v1921_v41  ;;  %v1858_v9 = vpop.permute.xlu0 %1857 }
 0x72a   :  { %v1932_v40 = vmax.f32 %v1924_v14, %v1931_v59  ;;  %v1907_v13 = vsel %vm1811_vm14, %v1858_v9, -1e+30  ;;  %v1853_v1 = vpop.permute.xlu1 %1852 }
 0x72b   :  { %v1930_v7 = vmax.f32 %v1922_v48, %v1929_v23  ;;  %v1927_v47 = vsel %vm1916_vm1, %v1907_v13, -inf  ;;  %v1906_v28 = vsel %vm1810_vm15, %v1853_v1, -1e+30 }
 0x72c   :  { %v1928_v12 = vmax.f32 %v1920_v39, %v1927_v47  ;;  %v1925_v25 = vsel %vm1916_vm1, %v1906_v28, -inf  ;;  %v1940_v5 = vmax.f32 %v1932_v40, %v1939_v26 }
 0x72d   :  { %v1926_v8 = vmax.f32 %v1919_v53, %v1925_v25  ;;  %v1898_v59 = vpop.permute.xlu0 %1897  ;;  %v1938_v36 = vmax.f32 %v1930_v7, %v1937_v61 }
 0x72e   :  { %v1936_v23 = vmax.f32 %v1928_v12, %v1935_v49  ;;  %v1915_v57 = vsel %vm1819_vm0, %v1898_v59, -1e+30  ;;  %v1893_v44 = vpop.permute.xlu1 %1892 }
 0x72f   :  { %v1943_v35 = vsel %vm1916_vm1, %v1915_v57, -inf  ;;  %v1934_v16 = vmax.f32 %v1926_v8, %v1933_v45  ;;  %v1914_v14 = vsel %vm1818_vm2, %v1893_v44, -1e+30  ;;  %v1945_v10 = vmax.f32 %v1938_v36, %v1940_v5 }
 0x730   :  { %v1944_v41 = vmax.f32 %v1936_v23, %v1943_v35  ;;  %v1941_v11 = vsel %vm1916_vm1, %v1914_v14, -inf }
 0x731   :  { %v1942_v17 = vmax.f32 %v1934_v16, %v1941_v11 }
 0x733   :  { %v1946_v48 = vmax.f32 %v1942_v17, %v1944_v41 }
 0x735   :  { %v1947_v9 = vmax.f32 %v1945_v10, %v1946_v48 }
 0x737   :  { %v1948_v42 = vrot.slane %v1947_v9, 4 }
 0x739   :  { %v1949_v63 = vmax.f32 %v1947_v9, %v1948_v42 }
 0x73b   :  { %v1950_v40 = vrot.slane %v1949_v63, 2 }
 0x73d   :  { %v1951_v13 = vmax.f32 %v1949_v63, %v1950_v40 }
 0x73f   :  { %v1952_v1 = vrot.slane %v1951_v13, 1 }
 0x741   :  { %v1953_v39 = vmax.f32 %v1951_v13, %v1952_v1 }
 0x743   :  { %v1955_v47 = vmul.f32 %v4338_v20, %v1953_v39  ;;  %v1954_v7 = vmul.f32 %v4347_v58, %v1953_v39  ;;  %v1956_v12 = vmul.f32 %v4368_v2, %v1953_v39  ;;  %v1957_v25 = vmul.f32 %v4363_v3, %v1953_v39 }
 0x744   :  { %v1958_v26 = vmul.f32 %v4365_v15, %v1953_v39  ;;  %v1959_v8 = vmul.f32 %v4356_v52, %v1953_v39  ;;  %v1960_v5 = vmul.f32 %v4372_v32, %v1953_v39  ;;  %v1961_v23 = vmul.f32 %v4370_v38, %v1953_v39 }
 0x745   :  { %v1973_v28 = vsel %vm1916_vm1, %v1955_v47, 0.0  ;;  %v1970_v53 = vsel %vm1916_vm1, %v1954_v7, 0.0  ;;  %v1976_v49 = vsel %vm1916_vm1, %v1956_v12, 0.0  ;;  %v1979_v45 = vsel %vm1916_vm1, %v1957_v25, 0.0 }
 0x746   :  { %1974 = vadd.xlane.f32.xlu0 %v1973_v28  ;;  %1971 = vadd.xlane.f32.xlu1 %v1970_v53  ;;  %v1982_v59 = vsel %vm1916_vm1, %v1958_v26, 0.0  ;;  %v1985_v61 = vsel %vm1916_vm1, %v1959_v8, 0.0  ;;  %v1988_v57 = vsel %vm1916_vm1, %v1960_v5, 0.0  ;;  %v1991_v44 = vsel %vm1916_vm1, %v1961_v23, 0.0 }
 0x747   :  { %v1962_v36 = vmul.f32 %v4330_v51, %v1953_v39  ;;  %v1963_v35 = vmul.f32 %v4328_v21, %v1953_v39  ;;  %v1964_v41 = vmul.f32 %v4345_v4, %v1953_v39  ;;  %v1965_v11 = vmul.f32 %v4343_v62, %v1953_v39 }
 0x748   :  { %v1966_v48 = vmul.f32 %v4354_v56, %v1953_v39  ;;  %v1967_v9 = vmul.f32 %v4352_v60, %v1953_v39  ;;  %v1968_v40 = vmul.f32 %v4391_v24, %v1953_v39  ;;  %v1969_v13 = vmul.f32 %v4377_v29, %v1953_v39 }
 0x749   :  { %v1994_v16 = vsel %vm1916_vm1, %v1962_v36, 0.0  ;;  %v1997_v14 = vsel %vm1916_vm1, %v1963_v35, 0.0  ;;  %v2000_v17 = vsel %vm1916_vm1, %v1964_v41, 0.0  ;;  %v2003_v10 = vsel %vm1916_vm1, %v1965_v11, 0.0 }
 0x74a   :  { %1977 = vadd.xlane.f32.xlu0 %v1976_v49  ;;  %1980 = vadd.xlane.f32.xlu1 %v1979_v45  ;;  %v2006_v42 = vsel %vm1916_vm1, %v1966_v48, 0.0  ;;  %v2009_v63 = vsel %vm1916_vm1, %v1967_v9, 0.0  ;;  %v2012_v1 = vsel %vm1916_vm1, %v1968_v40, 0.0  ;;  %v2015_v47 = vsel %vm1916_vm1, %v1969_v13, 0.0 }
 0x74e   :  { %1983 = vadd.xlane.f32.xlu0 %v1982_v59  ;;  %1986 = vadd.xlane.f32.xlu1 %v1985_v61 }
 0x752   :  { %1989 = vadd.xlane.f32.xlu0 %v1988_v57  ;;  %1992 = vadd.xlane.f32.xlu1 %v1991_v44 }
 0x756   :  { %1995 = vadd.xlane.f32.xlu0 %v1994_v16  ;;  %1998 = vadd.xlane.f32.xlu1 %v1997_v14 }
 0x75a   :  { %2001 = vadd.xlane.f32.xlu0 %v2000_v17  ;;  %2004 = vadd.xlane.f32.xlu1 %v2003_v10 }
 0x75e   :  { %2007 = vadd.xlane.f32.xlu0 %v2006_v42  ;;  %2010 = vadd.xlane.f32.xlu1 %v2009_v63 }
 0x762   :  { %2013 = vadd.xlane.f32.xlu0 %v2012_v1  ;;  %2016 = vadd.xlane.f32.xlu1 %v2015_v47 }
 0x7d3   :  { %v1975_v7 = vpop.xlane.xlu0 %1974  ;;  %v1972_v28 = vpop.xlane.xlu1 %1971 }
 0x7d4   :  { %v2019_v53 = vsub.f32 %v4281_v19, %v1975_v7  ;;  %v2018_v12 = vsub.f32 %v4283_v30, %v1972_v28 }
 0x7d6   :  { %v2036_v25 = vmul.f32 1.442695, %v2019_v53  ;;  %v2034_v49 = vmul.f32 1.442695, %v2018_v12  ;;  %v3309_v53 = vld [vmem:[%s4671_s4 + $0x18] sm:$0xff] }
 0x7d7   :  { %v1978_v45 = vpop.xlane.xlu0 %1977  ;;  %v1981_v26 = vpop.xlane.xlu1 %1980 }
 0x7d8   :  { %3242 = vpow2.f32 %v2036_v25  ;;  %v2020_v39 = vsub.f32 %v4289_v46, %v1978_v45  ;;  %v2021_v8 = vsub.f32 %v4287_v33, %v1981_v26 }
 0x7d9   :  { %3244 = vpow2.f32 %v2034_v49 }
 0x7da   :  { %v2038_v59 = vmul.f32 1.442695, %v2020_v39  ;;  %v2040_v61 = vmul.f32 1.442695, %v2021_v8 }
 0x7db   :  { %v1984_v5 = vpop.xlane.xlu0 %1983  ;;  %v1987_v23 = vpop.xlane.xlu1 %1986 }
 0x7dc   :  { %3246 = vpow2.f32 %v2038_v59  ;;  %v2022_v57 = vsub.f32 %v4295_v34, %v1984_v5  ;;  %v2023_v19 = vsub.f32 %v4293_v18, %v1987_v23  ;;  %v3306_v18 = vld [vmem:[%s4671_s4 + $0x8] sm:$0xff] }
 0x7dd   :  { %3248 = vpow2.f32 %v2040_v61  ;;  %v3311_v5 = vld [vmem:[%s4671_s4 + $0x28] sm:$0xff] }
 0x7de   :  { %v2042_v30 = vmul.f32 1.442695, %v2022_v57  ;;  %v2044_v44 = vmul.f32 1.442695, %v2023_v19 }
 0x7df   :  { %v1990_v36 = vpop.xlane.xlu0 %1989  ;;  %v1993_v35 = vpop.xlane.xlu1 %1992 }
 0x7e0   :  { %3250 = vpow2.f32 %v2042_v30  ;;  %v2024_v46 = vsub.f32 %v4301_v43, %v1990_v36  ;;  %v2025_v33 = vsub.f32 %v4299_v50, %v1993_v35  ;;  %v3307_v50 = vld [vmem:[%s4671_s4] sm:$0xff] }
 0x7e1   :  { %3252 = vpow2.f32 %v2044_v44 }
 0x7e2   :  { %v3243_v16 = vpop.eup %3242  ;;  %v2046_v14 = vmul.f32 1.442695, %v2024_v46  ;;  %v2048_v41 = vmul.f32 1.442695, %v2025_v33 }
 0x7e3   :  { %v3245_v11 = vpop.eup %3244  ;;  %v1996_v17 = vpop.xlane.xlu0 %1995  ;;  %v4474_v34 = vmul.f32 %v3306_v18, %v3243_v16  ;;  %v3313_v16 = vld [vmem:[%s4671_s4 + $0x38] sm:$0xff]  ;;  %v3315_v18 = vld [vmem:[%s4671_s4 + $0x48] sm:$0xff] }
 0x7e4   :  { %v1999_v10 = vpop.xlane.xlu1 %1998  ;;  %3254 = vpow2.f32 %v2046_v14  ;;  %v2026_v48 = vsub.f32 %v4265_v6, %v1996_v17  ;;  %v4481_v9 = vmul.f32 %v3307_v50, %v3245_v11 }
 0x7e5   :  { %v2027_v43 = vsub.f32 %v4263_v54, %v1999_v10  ;;  %3256 = vpow2.f32 %v2048_v41  ;;  %2089 = vperm.xlu1 %3145, %v4474_v34   ;;  %v3308_v54 = vld [vmem:[%s4671_s4 + $0x10] sm:$0xff] }
 0x7e6   :  { %v3247_v42 = vpop.eup %3246  ;;  %v2050_v63 = vmul.f32 1.442695, %v2026_v48  ;;  %2084 = vperm.xlu0 %3144, %v4481_v9  }
 0x7e7   :  { %v2052_v40 = vmul.f32 1.442695, %v2027_v43  ;;  %v3249_v13 = vpop.eup %3248  ;;  %v2002_v1 = vpop.xlane.xlu0 %2001  ;;  %v4488_v6 = vmul.f32 %v3308_v54, %v3247_v42  ;;  %v3316_v42 = vld [vmem:[%s4671_s4 + $0x50] sm:$0xff]  ;;  %v3318_v54 = vld [vmem:[%s4671_s4 + $0x60] sm:$0xff] }
 0x7e8   :  { %v2005_v47 = vpop.xlane.xlu1 %2004  ;;  %3258 = vpow2.f32 %v2050_v63  ;;  %v2028_v7 = vsub.f32 %v4271_v0, %v2002_v1  ;;  %v4495_v12 = vmul.f32 %v3309_v53, %v3249_v13 }
 0x7e9   :  { %v2029_v28 = vsub.f32 %v4269_v55, %v2005_v47  ;;  %3260 = vpow2.f32 %v2052_v40  ;;  %2094 = vperm.xlu1 %3145, %v4488_v6   ;;  %v3310_v55 = vld [vmem:[%s4671_s4 + $0x20] sm:$0xff]  ;;  %v3317_v40 = vld [vmem:[%s4671_s4 + $0x58] sm:$0xff] }
 0x7ea   :  { %v3251_v25 = vpop.eup %3250  ;;  %v2054_v49 = vmul.f32 1.442695, %v2028_v7  ;;  %2099 = vperm.xlu0 %3144, %v4495_v12  }
 0x7eb   :  { %v2056_v45 = vmul.f32 1.442695, %v2029_v28  ;;  %v3253_v26 = vpop.eup %3252  ;;  %v2008_v39 = vpop.xlane.xlu0 %2007  ;;  %v4502_v0 = vmul.f32 %v3310_v55, %v3251_v25  ;;  %v3319_v28 = vld [vmem:[%s4671_s4 + $0x68] sm:$0xff] }
 0x7ec   :  { %v2011_v8 = vpop.xlane.xlu1 %2010  ;;  %3262 = vpow2.f32 %v2054_v49  ;;  %v2030_v59 = vsub.f32 %v4277_v27, %v2008_v39  ;;  %v4509_v23 = vmul.f32 %v3311_v5, %v3253_v26  ;;  %v3321_v39 = vld [vmem:[%s4671_s4 + $0x78] sm:$0xff] }
 0x7ed   :  { %v2031_v61 = vsub.f32 %v4275_v37, %v2011_v8  ;;  %3264 = vpow2.f32 %v2056_v45  ;;  %2104 = vperm.xlu1 %3145, %v4502_v0   ;;  %v3312_v37 = vld [vmem:[%s4671_s4 + $0x30] sm:$0xff] }
 0x7ee   :  { %v3255_v57 = vpop.eup %3254  ;;  %v2058_v19 = vmul.f32 1.442695, %v2030_v59  ;;  %2109 = vperm.xlu0 %3144, %v4509_v23   ;;  %v3320_v45 = vld [vmem:[%s4671_s4 + $0x70] sm:$0xff] }
 0x7ef   :  { %v2060_v30 = vmul.f32 1.442695, %v2031_v61  ;;  %v3257_v44 = vpop.eup %3256  ;;  %v2014_v36 = vpop.xlane.xlu0 %2013  ;;  %v4516_v27 = vmul.f32 %v3312_v37, %v3255_v57 }
 0x7f0   :  { %v2017_v35 = vpop.xlane.xlu1 %2016  ;;  %3266 = vpow2.f32 %v2058_v19  ;;  %v2032_v46 = vsub.f32 %v4307_v31, %v2014_v36  ;;  %v4523_v14 = vmul.f32 %v3313_v16, %v3257_v44  ;;  %v3314_v31 = vld [vmem:[%s4671_s4 + $0x40] sm:$0xff]  ;;  %s3347_s4 = smov [#allocation3]  }
 0x7f1   :  { %v2033_v33 = vsub.f32 %v4305_v22, %v2017_v35  ;;  %3268 = vpow2.f32 %v2060_v30  ;;  %2114 = vperm.xlu1 %3145, %v4516_v27   ;;  %s2428_s26 = sshll.u32 %s3347_s4, 4  ;;  %s2429_s26 = int_to_ptr.vmem [resolvable:$true] %s2428_s26 }
 0x7f2   :  { %v3259_v41 = vpop.eup %3258  ;;  %v2062_v11 = vmul.f32 1.442695, %v2032_v46  ;;  %2119 = vperm.xlu0 %3144, %v4523_v14   ;;  %s3322_s27 = scalar_lea.vmem %s2429_s26, 2048  ;;  %p3327_p1 = scmp.lt.s32.totalorder %s2429_s26, %s2429_s26 }
 0x7f3   :  { %v2064_v17 = vmul.f32 1.442695, %v2033_v33  ;;  %v3261_v10 = vpop.eup %3260  ;;  %v4530_v22 = vmul.f32 %v3314_v31, %v3259_v41  ;;  %p3323_p0 = scmp.ne.s32.totalorder %s2429_s26, %s3322_s27  ;;  %p3328_p2 = scmp.lt.s32.totalorder %s3322_s27, %s3322_s27 }
 0x7f4   :  { %3270 = vpow2.f32 %v2062_v11  ;;  %v4535_v48 = vmul.f32 %v3315_v18, %v3261_v10 }
 0x7f5   :  { %3272 = vpow2.f32 %v2064_v17  ;;  %2124 = vperm.xlu1 %3145, %v4530_v22   ;;  %p3329_p3 = por %p3328_p2, %p3327_p1 }
 0x7f6   :  { %v3263_v43 = vpop.eup %3262  ;;  %2129 = vperm.xlu0 %3144, %v4535_v48  }
 0x7f7   :  { %v3265_v50 = vpop.eup %3264  ;;  %v4542_v63 = vmul.f32 %v3316_v42, %v3263_v43  ;;  %p3330_p4 = pnand %p3329_p3, %p3323_p0 }
 0x7f8   :  { %v4547_v13 = vmul.f32 %v3317_v40, %v3265_v50 }
 0x7f9   :  { %2134 = vperm.xlu1 %3145, %v4542_v63  }
 0x7fa   :  { %v3267_v1 = vpop.eup %3266  ;;  %2139 = vperm.xlu0 %3144, %v4547_v13  }
 0x7fb   :  { %v3269_v47 = vpop.eup %3268  ;;  %v4554_v7 = vmul.f32 %v3318_v54, %v3267_v1 }
 0x7fc   :  { %v4559_v53 = vmul.f32 %v3319_v28, %v3269_v47 }
 0x7fd   :  { %2144 = vperm.xlu1 %3145, %v4554_v7  }
 0x7fe   :  { %v3271_v25 = vpop.eup %3270  ;;  %2149 = vperm.xlu0 %3144, %v4559_v53  }
 0x7ff   :  { %v3273_v49 = vpop.eup %3272  ;;  %v4566_v26 = vmul.f32 %v3320_v45, %v3271_v25 }
 0x800   :  { %v4571_v8 = vmul.f32 %v3321_v39, %v3273_v49 }
 0x801   :  { %2154 = vperm.xlu1 %3145, %v4566_v26  }
 0x802   :  { %2159 = vperm.xlu0 %3144, %v4571_v8  }
 0x864   :  { %v2090_v55 = vpop.permute.xlu1 %2089 }
 0x865   :  { %v2085_v59 = vpop.permute.xlu0 %2084  ;;  %v2163_v61 = vmul.f32 %v4338_v20, %v2090_v55 }
 0x866   :  { %v2162_v5 = vmul.f32 %v4347_v58, %v2085_v59 }
 0x867   :  { %v2179_v57 = vsel %vm1916_vm1, %v2163_v61, 0.0 }
 0x868   :  { %v2178_v19 = vsel %vm1916_vm1, %v2162_v5, 0.0  ;;  %v2095_v30 = vpop.permute.xlu1 %2094 }
 0x869   :  { %v2100_v44 = vpop.permute.xlu0 %2099  ;;  %v2164_v36 = vmul.f32 %v4368_v2, %v2095_v30  ;;  %v2180_v35 = vadd.f32 %v2179_v57, %v2178_v19 }
 0x86a   :  { %v2165_v37 = vmul.f32 %v4363_v3, %v2100_v44 }
 0x86b   :  { %v2181_v46 = vsel %vm1916_vm1, %v2164_v36, 0.0 }
 0x86c   :  { %v2182_v33 = vadd.f32 %v2181_v46, %v2180_v35  ;;  %v2105_v16 = vpop.permute.xlu1 %2104  ;;  %v2183_v41 = vsel %vm1916_vm1, %v2165_v37, 0.0 }
 0x86d   :  { %v2110_v11 = vpop.permute.xlu0 %2109  ;;  %v2166_v17 = vmul.f32 %v4365_v15, %v2105_v16 }
 0x86e   :  { %v2167_v10 = vmul.f32 %v4356_v52, %v2110_v11  ;;  %v2184_v31 = vadd.f32 %v2183_v41, %v2182_v33 }
 0x86f   :  { %v2185_v18 = vsel %vm1916_vm1, %v2166_v17, 0.0 }
 0x870   :  { %v2186_v43 = vadd.f32 %v2185_v18, %v2184_v31  ;;  %v2115_v50 = vpop.permute.xlu1 %2114  ;;  %v2187_v42 = vsel %vm1916_vm1, %v2167_v10, 0.0 }
 0x871   :  { %v2120_v40 = vpop.permute.xlu0 %2119  ;;  %v2168_v1 = vmul.f32 %v4372_v32, %v2115_v50 }
 0x872   :  { %v2169_v47 = vmul.f32 %v4370_v38, %v2120_v40  ;;  %v2188_v54 = vadd.f32 %v2187_v42, %v2186_v43 }
 0x873   :  { %v2189_v28 = vsel %vm1916_vm1, %v2168_v1, 0.0 }
 0x874   :  { %v2190_v25 = vadd.f32 %v2189_v28, %v2188_v54  ;;  %v2125_v49 = vpop.permute.xlu1 %2124  ;;  %v2191_v45 = vsel %vm1916_vm1, %v2169_v47, 0.0 }
 0x875   :  { %v2130_v39 = vpop.permute.xlu0 %2129  ;;  %v2170_v55 = vmul.f32 %v4330_v51, %v2125_v49 }
 0x876   :  { %v2171_v59 = vmul.f32 %v4328_v21, %v2130_v39  ;;  %v2192_v61 = vadd.f32 %v2191_v45, %v2190_v25 }
 0x877   :  { %v2193_v5 = vsel %vm1916_vm1, %v2170_v55, 0.0 }
 0x878   :  { %v2194_v57 = vadd.f32 %v2193_v5, %v2192_v61  ;;  %v2135_v19 = vpop.permute.xlu1 %2134  ;;  %v2195_v30 = vsel %vm1916_vm1, %v2171_v59, 0.0 }
 0x879   :  { %v2140_v44 = vpop.permute.xlu0 %2139  ;;  %v2172_v36 = vmul.f32 %v4345_v4, %v2135_v19 }
 0x87a   :  { %v2173_v35 = vmul.f32 %v4343_v62, %v2140_v44  ;;  %v2196_v37 = vadd.f32 %v2195_v30, %v2194_v57 }
 0x87b   :  { %v2197_v46 = vsel %vm1916_vm1, %v2172_v36, 0.0 }
 0x87c   :  { %v2198_v33 = vadd.f32 %v2197_v46, %v2196_v37  ;;  %v2145_v16 = vpop.permute.xlu1 %2144  ;;  %v2199_v41 = vsel %vm1916_vm1, %v2173_v35, 0.0 }
 0x87d   :  { %v2150_v11 = vpop.permute.xlu0 %2149  ;;  %v2174_v17 = vmul.f32 %v4354_v56, %v2145_v16 }
 0x87e   :  { %v2175_v10 = vmul.f32 %v4352_v60, %v2150_v11  ;;  %v2200_v31 = vadd.f32 %v2199_v41, %v2198_v33 }
 0x87f   :  { %v2201_v18 = vsel %vm1916_vm1, %v2174_v17, 0.0 }
 0x880   :  { %v2202_v43 = vadd.f32 %v2201_v18, %v2200_v31  ;;  %v2155_v50 = vpop.permute.xlu1 %2154  ;;  %v2203_v42 = vsel %vm1916_vm1, %v2175_v10, 0.0 }
 0x881   :  { %v2160_v40 = vpop.permute.xlu0 %2159  ;;  %v2176_v1 = vmul.f32 %v4391_v24, %v2155_v50 }
 0x882   :  { %v2177_v47 = vmul.f32 %v4377_v29, %v2160_v40  ;;  %v2204_v54 = vadd.f32 %v2203_v42, %v2202_v43 }
 0x883   :  { %v2205_v28 = vsel %vm1916_vm1, %v2176_v1, 0.0 }
 0x884   :  { %v2206_v25 = vadd.f32 %v2205_v28, %v2204_v54  ;;  %v2207_v49 = vsel %vm1916_vm1, %v2177_v47, 0.0 }
 0x886   :  { %v2208_v45 = vadd.f32 %v2207_v49, %v2206_v25 }
 0x888   :  { %v2209_v39 = vrot.slane %v2208_v45, 4 }
 0x88a   :  { %v2210_v55 = vadd.f32 %v2209_v39, %v2208_v45 }
 0x88c   :  { %v2211_v59 = vrot.slane %v2210_v55, 2 }
 0x88e   :  { %v2212_v61 = vadd.f32 %v2211_v59, %v2210_v55 }
 0x890   :  { %v2213_v5 = vrot.slane %v2212_v61, 1 }
 0x892   :  { %v2214_v57 = vadd.f32 %v2213_v5, %v2212_v61 }
 0x894   :  { %v2216_v19 = vmul.f32 %v4338_v20, %v2214_v57  ;;  %v2215_v30 = vmul.f32 %v4347_v58, %v2214_v57  ;;  %v2217_v35 = vmul.f32 %v4368_v2, %v2214_v57  ;;  %v2218_v37 = vmul.f32 %v4363_v3, %v2214_v57 }
 0x895   :  { %v2219_v16 = vmul.f32 %v4365_v15, %v2214_v57  ;;  %v2220_v20 = vmul.f32 %v4356_v52, %v2214_v57  ;;  %v2221_v2 = vmul.f32 %v4372_v32, %v2214_v57  ;;  %v2222_v3 = vmul.f32 %v4370_v38, %v2214_v57 }
 0x896   :  { %v2234_v44 = vsel %vm1916_vm1, %v2216_v19, 0.0  ;;  %v2231_v36 = vsel %vm1916_vm1, %v2215_v30, 0.0  ;;  %v2237_v46 = vsel %vm1916_vm1, %v2217_v35, 0.0  ;;  %v2240_v33 = vsel %vm1916_vm1, %v2218_v37, 0.0 }
 0x897   :  { %2235 = vadd.xlane.f32.xlu0 %v2234_v44  ;;  %2232 = vadd.xlane.f32.xlu1 %v2231_v36  ;;  %v2243_v58 = vsel %vm1916_vm1, %v2219_v16, 0.0  ;;  %v2246_v41 = vsel %vm1916_vm1, %v2220_v20, 0.0  ;;  %v2249_v11 = vsel %vm1916_vm1, %v2221_v2, 0.0  ;;  %v2252_v17 = vsel %vm1916_vm1, %v2222_v3, 0.0 }
 0x898   :  { %v2223_v15 = vmul.f32 %v4330_v51, %v2214_v57  ;;  %v2224_v52 = vmul.f32 %v4328_v21, %v2214_v57  ;;  %v2225_v32 = vmul.f32 %v4345_v4, %v2214_v57  ;;  %v2226_v38 = vmul.f32 %v4343_v62, %v2214_v57 }
 0x899   :  { %v2227_v51 = vmul.f32 %v4354_v56, %v2214_v57  ;;  %v2228_v21 = vmul.f32 %v4352_v60, %v2214_v57  ;;  %v2229_v4 = vmul.f32 %v4391_v24, %v2214_v57  ;;  %v2230_v62 = vmul.f32 %v4377_v29, %v2214_v57 }
 0x89a   :  { %v2255_v10 = vsel %vm1916_vm1, %v2223_v15, 0.0  ;;  %v2258_v31 = vsel %vm1916_vm1, %v2224_v52, 0.0  ;;  %v2261_v18 = vsel %vm1916_vm1, %v2225_v32, 0.0  ;;  %v2264_v43 = vsel %vm1916_vm1, %v2226_v38, 0.0 }
 0x89b   :  { %2238 = vadd.xlane.f32.xlu0 %v2237_v46  ;;  %2241 = vadd.xlane.f32.xlu1 %v2240_v33  ;;  %v2267_v50 = vsel %vm1916_vm1, %v2227_v51, 0.0  ;;  %v2270_v42 = vsel %vm1916_vm1, %v2228_v21, 0.0  ;;  %v2273_v40 = vsel %vm1916_vm1, %v2229_v4, 0.0  ;;  %v2276_v1 = vsel %vm1916_vm1, %v2230_v62, 0.0 }
 0x89f   :  { %2244 = vadd.xlane.f32.xlu0 %v2243_v58  ;;  %2247 = vadd.xlane.f32.xlu1 %v2246_v41 }
 0x8a3   :  { %2250 = vadd.xlane.f32.xlu0 %v2249_v11  ;;  %2253 = vadd.xlane.f32.xlu1 %v2252_v17 }
 0x8a7   :  { %2256 = vadd.xlane.f32.xlu0 %v2255_v10  ;;  %2259 = vadd.xlane.f32.xlu1 %v2258_v31 }
 0x8ab   :  { %2262 = vadd.xlane.f32.xlu0 %v2261_v18  ;;  %2265 = vadd.xlane.f32.xlu1 %v2264_v43 }
 0x8af   :  { %2268 = vadd.xlane.f32.xlu0 %v2267_v50  ;;  %2271 = vadd.xlane.f32.xlu1 %v2270_v42 }
 0x8b3   :  { %2274 = vadd.xlane.f32.xlu0 %v2273_v40  ;;  %2277 = vadd.xlane.f32.xlu1 %v2276_v1 }
 0x924   :  { %v2236_v56 = vpop.xlane.xlu0 %2235  ;;  %v2233_v60 = vpop.xlane.xlu1 %2232 }
 0x925   :  { %v2280_v47 = vadd.f32 1e-16, %v2236_v56  ;;  %v2279_v54 = vadd.f32 1e-16, %v2233_v60 }
 0x927   :  { %3274 = vrcp.f32 %v2280_v47 }
 0x928   :  { %3276 = vrcp.f32 %v2279_v54  ;;  %v2239_v28 = vpop.xlane.xlu0 %2238  ;;  %v2242_v25 = vpop.xlane.xlu1 %2241 }
 0x929   :  { %v2281_v49 = vadd.f32 1e-16, %v2239_v28  ;;  %v2282_v24 = vadd.f32 1e-16, %v2242_v25 }
 0x92b   :  { %3278 = vrcp.f32 %v2281_v49 }
 0x92c   :  { %3280 = vrcp.f32 %v2282_v24  ;;  %v2245_v29 = vpop.xlane.xlu0 %2244  ;;  %v2248_v45 = vpop.xlane.xlu1 %2247 }
 0x92d   :  { %v2283_v39 = vadd.f32 1e-16, %v2245_v29  ;;  %v2284_v55 = vadd.f32 1e-16, %v2248_v45 }
 0x92f   :  { %3282 = vrcp.f32 %v2283_v39 }
 0x930   :  { %3284 = vrcp.f32 %v2284_v55  ;;  %v2251_v59 = vpop.xlane.xlu0 %2250  ;;  %v2254_v61 = vpop.xlane.xlu1 %2253 }
 0x931   :  { %v3275_v5 = vpop.eup %3274  ;;  %v2285_v57 = vadd.f32 1e-16, %v2251_v59  ;;  %v2286_v19 = vadd.f32 1e-16, %v2254_v61 }
 0x932   :  { %v3277_v30 = vpop.eup %3276  ;;  %v2312_v44 = vmul.f32 %v3275_v5, %v4474_v34 }
 0x933   :  { %3286 = vrcp.f32 %v2285_v57  ;;  %v2311_v36 = vmul.f32 %v3277_v30, %v4481_v9 }
 0x934   :  { %3288 = vrcp.f32 %v2286_v19  ;;  %v2257_v35 = vpop.xlane.xlu0 %2256  ;;  %2334 = vperm.xlu1 %3145, %v2312_v44   ;;  %v2260_v37 = vpop.xlane.xlu1 %2259 }
 0x935   :  { %v3279_v46 = vpop.eup %3278  ;;  %v2287_v33 = vadd.f32 1e-16, %v2257_v35  ;;  %2329 = vperm.xlu0 %3144, %v2311_v36   ;;  %v2288_v16 = vadd.f32 1e-16, %v2260_v37 }
 0x936   :  { %v3281_v20 = vpop.eup %3280  ;;  %v2313_v58 = vmul.f32 %v3279_v46, %v4488_v6 }
 0x937   :  { %3290 = vrcp.f32 %v2287_v33  ;;  %v2314_v41 = vmul.f32 %v3281_v20, %v4495_v12 }
 0x938   :  { %3292 = vrcp.f32 %v2288_v16  ;;  %v2263_v2 = vpop.xlane.xlu0 %2262  ;;  %2339 = vperm.xlu1 %3145, %v2313_v58   ;;  %v2266_v34 = vpop.xlane.xlu1 %2265 }
 0x939   :  { %v3283_v3 = vpop.eup %3282  ;;  %v2289_v9 = vadd.f32 1e-16, %v2263_v2  ;;  %2344 = vperm.xlu0 %3144, %v2314_v41   ;;  %v2290_v11 = vadd.f32 1e-16, %v2266_v34 }
 0x93a   :  { %v3285_v17 = vpop.eup %3284  ;;  %v2315_v15 = vmul.f32 %v3283_v3, %v4502_v0 }
 0x93b   :  { %3294 = vrcp.f32 %v2289_v9  ;;  %v2316_v52 = vmul.f32 %v3285_v17, %v4509_v23 }
 0x93c   :  { %3296 = vrcp.f32 %v2290_v11  ;;  %v2269_v10 = vpop.xlane.xlu0 %2268  ;;  %2349 = vperm.xlu1 %3145, %v2315_v15   ;;  %v2272_v6 = vpop.xlane.xlu1 %2271 }
 0x93d   :  { %v3287_v31 = vpop.eup %3286  ;;  %v2291_v12 = vadd.f32 1e-16, %v2269_v10  ;;  %2354 = vperm.xlu0 %3144, %v2316_v52   ;;  %v2292_v32 = vadd.f32 1e-16, %v2272_v6 }
 0x93e   :  { %v3289_v38 = vpop.eup %3288  ;;  %v2317_v18 = vmul.f32 %v3287_v31, %v4516_v27 }
 0x93f   :  { %3298 = vrcp.f32 %v2291_v12  ;;  %v2318_v43 = vmul.f32 %v3289_v38, %v4523_v14 }
 0x940   :  { %3300 = vrcp.f32 %v2292_v32  ;;  %v2275_v51 = vpop.xlane.xlu0 %2274  ;;  %2359 = vperm.xlu1 %3145, %v2317_v18   ;;  %v2278_v0 = vpop.xlane.xlu1 %2277 }
 0x941   :  { %v3291_v21 = vpop.eup %3290  ;;  %v2293_v23 = vadd.f32 1e-16, %v2275_v51  ;;  %2364 = vperm.xlu0 %3144, %v2318_v43   ;;  %v2294_v50 = vadd.f32 1e-16, %v2278_v0 }
 0x942   :  { %v3293_v42 = vpop.eup %3292  ;;  %v2319_v4 = vmul.f32 %v3291_v21, %v4530_v22 }
 0x943   :  { %3302 = vrcp.f32 %v2293_v23  ;;  %v2320_v62 = vmul.f32 %v3293_v42, %v4535_v48 }
 0x944   :  { %3304 = vrcp.f32 %v2294_v50  ;;  %2369 = vperm.xlu1 %3145, %v2319_v4  }
 0x945   :  { %v3295_v27 = vpop.eup %3294  ;;  %2374 = vperm.xlu0 %3144, %v2320_v62  }
 0x946   :  { %v3297_v40 = vpop.eup %3296  ;;  %v2321_v14 = vmul.f32 %v3295_v27, %v4542_v63 }
 0x947   :  { %v2322_v1 = vmul.f32 %v3297_v40, %v4547_v13 }
 0x948   :  { %2379 = vperm.xlu1 %3145, %v2321_v14  }
 0x949   :  { %v3299_v56 = vpop.eup %3298  ;;  %2384 = vperm.xlu0 %3144, %v2322_v1  }
 0x94a   :  { %v3301_v60 = vpop.eup %3300  ;;  %v2323_v47 = vmul.f32 %v3299_v56, %v4554_v7 }
 0x94b   :  { %v2324_v22 = vmul.f32 %v3301_v60, %v4559_v53 }
 0x94c   :  { %2389 = vperm.xlu1 %3145, %v2323_v47  }
 0x94d   :  { %v3303_v54 = vpop.eup %3302  ;;  %2394 = vperm.xlu0 %3144, %v2324_v22  }
 0x94e   :  { %v3305_v48 = vpop.eup %3304  ;;  %v2325_v28 = vmul.f32 %v3303_v54, %v4566_v26 }
 0x94f   :  { %v2326_v25 = vmul.f32 %v3305_v48, %v4571_v8 }
 0x950   :  { %2399 = vperm.xlu1 %3145, %v2325_v28  }
 0x951   :  { %2404 = vperm.xlu0 %3144, %v2326_v25  }
 0x9b3   :  { %v2335_v63 = vpop.permute.xlu1 %2334 }
 0x9b4   :  { %v2330_v13 = vpop.permute.xlu0 %2329  ;;  %2408 = vst [vmem:[#allocation3 + $0x8] sm:$0xff] %v2335_v63 }
 0x9b5   :  { %2407 = vst [vmem:[#allocation3] sm:$0xff] %v2330_v13 }
 0x9b7   :  { %v2340_v49 = vpop.permute.xlu1 %2339 }
 0x9b8   :  { %v2345_v24 = vpop.permute.xlu0 %2344  ;;  %2409 = vst [vmem:[#allocation3 + $0x10] sm:$0xff] %v2340_v49 }
 0x9b9   :  { %2410 = vst [vmem:[#allocation3 + $0x18] sm:$0xff] %v2345_v24 }
 0x9bb   :  { %v2350_v7 = vpop.permute.xlu1 %2349 }
 0x9bc   :  { %v2355_v53 = vpop.permute.xlu0 %2354  ;;  %2411 = vst [vmem:[#allocation3 + $0x20] sm:$0xff] %v2350_v7 }
 0x9bd   :  { %2412 = vst [vmem:[#allocation3 + $0x28] sm:$0xff] %v2355_v53 }
 0x9bf   :  { %v2360_v29 = vpop.permute.xlu1 %2359 }
 0x9c0   :  { %v2365_v45 = vpop.permute.xlu0 %2364  ;;  %2413 = vst [vmem:[#allocation3 + $0x30] sm:$0xff] %v2360_v29 }
 0x9c1   :  { %2414 = vst [vmem:[#allocation3 + $0x38] sm:$0xff] %v2365_v45 }
 0x9c3   :  { %v2370_v26 = vpop.permute.xlu1 %2369 }
 0x9c4   :  { %v2375_v8 = vpop.permute.xlu0 %2374  ;;  %2415 = vst [vmem:[#allocation3 + $0x40] sm:$0xff] %v2370_v26 }
 0x9c5   :  { %2416 = vst [vmem:[#allocation3 + $0x48] sm:$0xff] %v2375_v8 }
 0x9c7   :  { %v2380_v39 = vpop.permute.xlu1 %2379 }
 0x9c8   :  { %v2385_v55 = vpop.permute.xlu0 %2384  ;;  %2417 = vst [vmem:[#allocation3 + $0x50] sm:$0xff] %v2380_v39 }
 0x9c9   :  { %2418 = vst [vmem:[#allocation3 + $0x58] sm:$0xff] %v2385_v55 }
 0x9cb   :  { %v2390_v59 = vpop.permute.xlu1 %2389 }
 0x9cc   :  { %v2395_v61 = vpop.permute.xlu0 %2394  ;;  %2419 = vst [vmem:[#allocation3 + $0x60] sm:$0xff] %v2390_v59 }
 0x9cd   :  { %2420 = vst [vmem:[#allocation3 + $0x68] sm:$0xff] %v2395_v61 }
 0x9cf   :  { %v2400_v5 = vpop.permute.xlu1 %2399 }
 0x9d0   :  { %v2405_v57 = vpop.permute.xlu0 %2404  ;;  %2421 = vst [vmem:[#allocation3 + $0x70] sm:$0xff] %v2400_v5 }
 0x9d1   :  { %2422 = vst [vmem:[#allocation3 + $0x78] sm:$0xff] %v2405_v57 }
 0x9d2   :  { %3333 = shalt.err (!%p3330_p4)
}
 0x9d3   :  { %s3334_s1 = scalar_lea.hbm %s4679_s12, 2048 }
 0x9d4   :  { %p3335_p5 = scmp.ne.s32.totalorder %s4679_s12, %s3334_s1  ;;  %p3338_p6 = scmp.lt.u32.totalorder %s3334_s1, %s4679_s12 }
 0x9d6   :  { %p3340_p7 = pnand %p3338_p6, %p3335_p5 }
 0x9d8   :  { %3343 = shalt.err (!%p3340_p7)
}
 0x9d9   :  { %s3348_s14 = smov 128   ;;  %s3349_s9 = smov 8  }
 0x9da   :  { %2434 = dma.vmem_to_hbm [thread:$0]  %s2429_s26, 2048, %s4679_s12, [#allocation4], %s3348_s14, %s3348_s14, %s3349_s9  }
 0x9db   :  { %3344 = dma.done.wait [#allocation4], 2048  }
 0x9dc   :  { %3345 = vsyncadd [#allocation4], 4294965248 }
 0x9dd   :  { %2438 = vsyncpa [#allocation4], 1 }

</bundles_post_ra>
